<compile_context>
chip_gen: v7x
topology: tpu7x:2x2x1
jax: 0.10.0
libtpu: 0.0.40
codegen_flags: <defaults>
</compile_context>

<pallas_src>
import jax
import jax.numpy as jnp
from jax.experimental import pallas as pl
from jax.experimental.pallas import tpu as pltpu

# ---------------- model dims (small, consistent with the module) -------------
B, C, H, W = 2, 4, 16, 16          # input image batch (NCHW)
IN_FLAT = C * H * W                # 1024
REPR_DIM = 512                     # projector expects dim=512 (MLP(512, ...))
HIDDEN = 256                       # projection_hidden_size (4096 in paper; small here)
PROJ = 128                         # projection_size
BN_EPS = 1e-5

# Packed per-column constants: [bb | gamma | beta | b2]  (all offsets are 128-multiples)
OFF_BB = 0
OFF_GAMMA = OFF_BB + REPR_DIM          # 512
OFF_BETA = OFF_GAMMA + HIDDEN          # 768
OFF_B2 = OFF_BETA + HIDDEN             # 1024
CONST_LEN = OFF_B2 + PROJ              # 1152 = 9 * 128


def _netwrapper_kernel(x_ref, wb_ref, w1_ref, w2_ref, consts_ref,
                       repr_ref, proj_ref):
    # In-kernel bf16 cast of the (tiny, f32) input block.
    x = x_ref[...].astype(jnp.bfloat16)                              # [B, IN_FLAT]

    bb = consts_ref[:, OFF_BB:OFF_GAMMA]                             # [1, REPR_DIM]
    gamma = consts_ref[:, OFF_GAMMA:OFF_BETA]                        # [1, HIDDEN]
    beta = consts_ref[:, OFF_BETA:OFF_B2]                            # [1, HIDDEN]
    b2 = consts_ref[:, OFF_B2:CONST_LEN]                             # [1, PROJ]

    # ---- backbone feature block: Linear(IN_FLAT -> 512) + bias + ReLU.
    # (flatten is the identity for a [B, 512] feature.)
    rep = jnp.maximum(
        jnp.dot(x, wb_ref[...], preferred_element_type=jnp.float32) + bb, 0.0)
    repr_ref[...] = rep                                              # [B, 512] f32

    # ---- projector MLP: Linear -> BatchNorm1d (batch stats) -> ReLU -> Linear
    # b1 omitted: exactly cancelled by the training-mode BN batch-mean subtraction.
    h = jnp.dot(rep.astype(jnp.bfloat16), w1_ref[...],
                preferred_element_type=jnp.float32)                  # [B, HIDDEN] f32
    mean = jnp.mean(h, axis=0, keepdims=True)                        # [1, HIDDEN]
    var = jnp.mean((h - mean) * (h - mean), axis=0, keepdims=True)   # biased (train)
    # Fold BN affine into one scale/shift pass.
    scale = gamma * jax.lax.rsqrt(var + BN_EPS)
    shift = beta - mean * scale
    h = jnp.maximum(h * scale + shift, 0.0)                          # BN + ReLU
    proj_ref[...] = (jnp.dot(h.astype(jnp.bfloat16), w2_ref[...],
                             preferred_element_type=jnp.float32)
                     + b2)                                           # [B, PROJ]


# Advisory cost for XLA scheduling around the (otherwise opaque) custom call.
_FLOPS = 2 * B * (IN_FLAT * REPR_DIM + REPR_DIM * HIDDEN + HIDDEN * PROJ)
_BYTES = (B * IN_FLAT * 4                 # x (f32 in)
          + IN_FLAT * REPR_DIM * 2        # wb (bf16)
          + REPR_DIM * HIDDEN * 2         # w1 (bf16)
          + HIDDEN * PROJ * 2             # w2 (bf16)
          + CONST_LEN * 4                 # packed consts (f32)
          + B * REPR_DIM * 4 + B * PROJ * 4)   # outputs (f32)


@jax.jit
def netwrapper_forward(x, params):
    """x: [B, C, H, W] float32 (NCHW). Returns (representation [B,512], projection [B,PROJ])."""
    # NCHW flatten of a contiguous array is metadata-only; bf16 cast happens in-kernel.
    x_flat = x.reshape(x.shape[0], -1)                               # [B, IN_FLAT] f32

    wb, w1, w2, consts = params["wb"], params["w1"], params["w2"], params["consts"]

    grid_spec = pltpu.PrefetchScalarGridSpec(
        num_scalar_prefetch=0,
        grid=(1,),                                                   # single step: latency-bound
        in_specs=[
            pl.BlockSpec((B, IN_FLAT), lambda i: (0, 0)),            # x (f32, tiny)
            pl.BlockSpec((IN_FLAT, REPR_DIM), lambda i: (0, 0)),     # wb (bf16, resident)
            pl.BlockSpec((REPR_DIM, HIDDEN), lambda i: (0, 0)),      # w1 (bf16, resident)
            pl.BlockSpec((HIDDEN, PROJ), lambda i: (0, 0)),          # w2 (bf16, resident)
            pl.BlockSpec((1, CONST_LEN), lambda i: (0, 0)),          # packed bb/gamma/beta/b2
        ],
        out_specs=[
            pl.BlockSpec((B, REPR_DIM), lambda i: (0, 0)),           # representation
            pl.BlockSpec((B, PROJ), lambda i: (0, 0)),               # projection
        ],
    )

    representation, projection = pl.pallas_call(
        _netwrapper_kernel,
        grid_spec=grid_spec,
        out_shape=(jax.ShapeDtypeStruct((B, REPR_DIM), jnp.float32),
                   jax.ShapeDtypeStruct((B, PROJ), jnp.float32)),
        compiler_params=pltpu.CompilerParams(
            dimension_semantics=("arbitrary",)),
        cost_estimate=pl.CostEstimate(flops=_FLOPS,
                                      transcendentals=HIDDEN,
                                      bytes_accessed=_BYTES),
    )(x_flat, wb, w1, w2, consts)
    return representation, projection


def reference_forward(x, params):
    """Pure-JAX reference using the same bf16 weights / f32 accumulation (keeps b1)."""
    x_flat = x.reshape(x.shape[0], -1).astype(jnp.bfloat16)
    rep = jnp.maximum(
        jnp.dot(x_flat, params["wb"], preferred_element_type=jnp.float32)
        + params["bb"], 0.0)
    h = (jnp.dot(rep.astype(jnp.bfloat16), params["w1"],
                 preferred_element_type=jnp.float32) + params["b1"])
    mean = jnp.mean(h, axis=0, keepdims=True)
    var = jnp.mean((h - mean) ** 2, axis=0, keepdims=True)
    h = (h - mean) / jnp.sqrt(var + BN_EPS) * params["gamma"] + params["beta"]
    h = jnp.maximum(h, 0.0)
    proj = (jnp.dot(h.astype(jnp.bfloat16), params["w2"],
                    preferred_element_type=jnp.float32) + params["b2"])
    return rep, proj


def init_params(key):
    ks = jax.random.split(key, 5)
    scale = 0.02
    params = {
        # synthetic backbone feature block (bf16 weights, f32 bias)
        "wb": (scale * jax.random.normal(ks[0], (IN_FLAT, REPR_DIM), jnp.float32)
               ).astype(jnp.bfloat16),
        "bb": jnp.zeros((1, REPR_DIM), jnp.float32),
        # projector MLP: Linear(512, HIDDEN)
        "w1": (scale * jax.random.normal(ks[1], (REPR_DIM, HIDDEN), jnp.float32)
               ).astype(jnp.bfloat16),
        "b1": scale * jax.random.normal(ks[2], (1, HIDDEN), jnp.float32),
        # BatchNorm1d(HIDDEN) affine params (PyTorch default init: gamma=1, beta=0)
        "gamma": jnp.ones((1, HIDDEN), jnp.float32),
        "beta": jnp.zeros((1, HIDDEN), jnp.float32),
        # projector MLP: Linear(HIDDEN, PROJ)
        "w2": (scale * jax.random.normal(ks[3], (HIDDEN, PROJ), jnp.float32)
               ).astype(jnp.bfloat16),
        "b2": scale * jax.random.normal(ks[4], (1, PROJ), jnp.float32),
    }
    # Pack the small per-column constants once (outside jit) -> single kernel DMA.
    # (b1 intentionally excluded: dead under training-mode BatchNorm.)
    params["consts"] = jnp.concatenate(
        [params["bb"], params["gamma"], params["beta"], params["b2"]], axis=-1)
    assert params["consts"].shape == (1, CONST_LEN)
    return params


if __name__ == "__main__":
    key = jax.random.PRNGKey(0)
    k_x, k_p = jax.random.split(key)
    x = jax.random.normal(k_x, (B, C, H, W), jnp.float32)
    params = init_params(k_p)

    representation, projection = netwrapper_forward(x, params)
    jax.block_until_ready((representation, projection))

    assert representation.shape == (B, REPR_DIM)
    assert projection.shape == (B, PROJ)
    assert bool(jnp.all(jnp.isfinite(representation)))
    assert bool(jnp.all(jnp.isfinite(projection)))

    # Correctness vs pure-JAX reference (same bf16 weights; tolerance covers
    # rsqrt-vs-sqrt and the b1-cancellation fp noise).
    rep_ref, proj_ref = reference_forward(x, params)
    assert bool(jnp.allclose(representation, rep_ref, rtol=2e-2, atol=2e-2))
    assert bool(jnp.allclose(projection, proj_ref, rtol=2e-2, atol=2e-2))

    print("KERNEL_OK")
</pallas_src>

<mosaic_0001>
module attributes {stable_mosaic.version = 11 : i64} {
  func.func @_netwrapper_kernel(%arg0: i32, %arg1: memref<2x1024xf32, #tpu.memory_space<vmem>>, %arg2: memref<1024x512xbf16, #tpu.memory_space<vmem>>, %arg3: memref<512x256xbf16, #tpu.memory_space<vmem>>, %arg4: memref<256x128xbf16, #tpu.memory_space<vmem>>, %arg5: memref<1x1152xf32, #tpu.memory_space<vmem>>, %arg6: memref<2x512xf32, #tpu.memory_space<vmem>>, %arg7: memref<2x128xf32, #tpu.memory_space<vmem>>) attributes {dimension_semantics = [#tpu.dimension_semantics<arbitrary>], iteration_bounds = array<i64: 1>, scalar_prefetch = 0 : i64, scratch_operands = 0 : i64, tpu.core_type = #tpu.core_type<tc>, window_params = [{pipeline_mode = #tpu.pipeline_mode<synchronous>, transform_indices = @transform_0, window_bounds = array<i64: 2, 1024>}, {pipeline_mode = #tpu.pipeline_mode<synchronous>, transform_indices = @transform_1, window_bounds = array<i64: 1024, 512>}, {pipeline_mode = #tpu.pipeline_mode<synchronous>, transform_indices = @transform_2, window_bounds = array<i64: 512, 256>}, {pipeline_mode = #tpu.pipeline_mode<synchronous>, transform_indices = @transform_3, window_bounds = array<i64: 256, 128>}, {pipeline_mode = #tpu.pipeline_mode<synchronous>, transform_indices = @transform_4, window_bounds = array<i64: 1, 1152>}, {pipeline_mode = #tpu.pipeline_mode<synchronous>, transform_indices = @transform_5, window_bounds = array<i64: 2, 512>}, {pipeline_mode = #tpu.pipeline_mode<synchronous>, transform_indices = @transform_6, window_bounds = array<i64: 2, 128>}]} {
    %c0 = arith.constant 0 : index
    %c0_0 = arith.constant 0 : index
    %0 = vector.load %arg1[%c0, %c0_0] : memref<2x1024xf32, #tpu.memory_space<vmem>>, vector<2x1024xf32>
    %1 = arith.truncf %0 : vector<2x1024xf32> to vector<2x1024xbf16>
    %c0_1 = arith.constant 0 : index
    %c0_2 = arith.constant 0 : index
    %2 = vector.load %arg5[%c0_1, %c0_2] : memref<1x1152xf32, #tpu.memory_space<vmem>>, vector<1x512xf32>
    %c0_3 = arith.constant 0 : index
    %c512 = arith.constant 512 : index
    %3 = vector.load %arg5[%c0_3, %c512] : memref<1x1152xf32, #tpu.memory_space<vmem>>, vector<1x256xf32>
    %c0_4 = arith.constant 0 : index
    %c768 = arith.constant 768 : index
    %4 = vector.load %arg5[%c0_4, %c768] : memref<1x1152xf32, #tpu.memory_space<vmem>>, vector<1x256xf32>
    %c0_5 = arith.constant 0 : index
    %c1024 = arith.constant 1024 : index
    %5 = vector.load %arg5[%c0_5, %c1024] : memref<1x1152xf32, #tpu.memory_space<vmem>>, vector<1x128xf32>
    %c0_6 = arith.constant 0 : index
    %c0_7 = arith.constant 0 : index
    %6 = vector.load %arg2[%c0_6, %c0_7] : memref<1024x512xbf16, #tpu.memory_space<vmem>>, vector<1024x512xbf16>
    %cst = arith.constant dense<0.000000e+00> : vector<2x512xf32>
    %7 = tpu.matmul %1, %6, %cst {dimension_numbers = #tpu.dot_dimension_numbers<[1], [0], [0], [1], [0, 0, 1, 1], [], []>} : vector<2x1024xbf16>, vector<1024x512xbf16>, vector<2x512xf32> -> vector<2x512xf32>
    %8 = vector.broadcast %2 : vector<1x512xf32> to vector<2x512xf32>
    %9 = arith.addf %7, %8 : vector<2x512xf32>
    %cst_8 = arith.constant 0.000000e+00 : f32
    %10 = vector.broadcast %cst_8 : f32 to vector<2x512xf32>
    %11 = arith.maximumf %9, %10 : vector<2x512xf32>
    %c0_9 = arith.constant 0 : index
    %c0_10 = arith.constant 0 : index
    %12 = vector.load %arg6[%c0_9, %c0_10] : memref<2x512xf32, #tpu.memory_space<vmem>>, vector<2x512xf32>
    tpu.vector_store %arg6[%c0_9, %c0_10], %11 {strides = array<i32>} : memref<2x512xf32, #tpu.memory_space<vmem>>, vector<2x512xf32>,
    %13 = arith.truncf %11 : vector<2x512xf32> to vector<2x512xbf16>
    %c0_11 = arith.constant 0 : index
    %c0_12 = arith.constant 0 : index
    %14 = vector.load %arg3[%c0_11, %c0_12] : memref<512x256xbf16, #tpu.memory_space<vmem>>, vector<512x256xbf16>
    %cst_13 = arith.constant dense<0.000000e+00> : vector<2x256xf32>
    %15 = tpu.matmul %13, %14, %cst_13 {dimension_numbers = #tpu.dot_dimension_numbers<[1], [0], [0], [1], [0, 0, 1, 1], [], []>} : vector<2x512xbf16>, vector<512x256xbf16>, vector<2x256xf32> -> vector<2x256xf32>
    %cst_14 = arith.constant dense<0.000000e+00> : vector<256xf32>
    %16 = vector.multi_reduction <add>, %15, %cst_14 [0] : vector<2x256xf32> to vector<256xf32>
    %17 = vector.shape_cast %16 : vector<256xf32> to vector<1x256xf32>
    %cst_15 = arith.constant 2.000000e+00 : f32
    %18 = vector.broadcast %cst_15 : f32 to vector<1x256xf32>
    %19 = arith.divf %17, %18 : vector<1x256xf32>
    %20 = vector.broadcast %19 : vector<1x256xf32> to vector<2x256xf32>
    %21 = arith.subf %15, %20 : vector<2x256xf32>
    %22 = vector.broadcast %19 : vector<1x256xf32> to vector<2x256xf32>
    %23 = arith.subf %15, %22 : vector<2x256xf32>
    %24 = arith.mulf %21, %23 : vector<2x256xf32>
    %cst_16 = arith.constant dense<0.000000e+00> : vector<256xf32>
    %25 = vector.multi_reduction <add>, %24, %cst_16 [0] : vector<2x256xf32> to vector<256xf32>
    %26 = vector.shape_cast %25 : vector<256xf32> to vector<1x256xf32>
    %cst_17 = arith.constant 2.000000e+00 : f32
    %27 = vector.broadcast %cst_17 : f32 to vector<1x256xf32>
    %28 = arith.divf %26, %27 : vector<1x256xf32>
    %cst_18 = arith.constant 9.99999974E-6 : f32
    %29 = vector.broadcast %cst_18 : f32 to vector<1x256xf32>
    %30 = arith.addf %28, %29 : vector<1x256xf32>
    %31 = math.rsqrt %30 : vector<1x256xf32>
    %32 = arith.mulf %3, %31 : vector<1x256xf32>
    %33 = arith.mulf %19, %32 : vector<1x256xf32>
    %34 = arith.subf %4, %33 : vector<1x256xf32>
    %35 = vector.broadcast %32 : vector<1x256xf32> to vector<2x256xf32>
    %36 = arith.mulf %15, %35 : vector<2x256xf32>
    %37 = vector.broadcast %34 : vector<1x256xf32> to vector<2x256xf32>
    %38 = arith.addf %36, %37 : vector<2x256xf32>
    %cst_19 = arith.constant 0.000000e+00 : f32
    %39 = vector.broadcast %cst_19 : f32 to vector<2x256xf32>
    %40 = arith.maximumf %38, %39 : vector<2x256xf32>
    %41 = arith.truncf %40 : vector<2x256xf32> to vector<2x256xbf16>
    %c0_20 = arith.constant 0 : index
    %c0_21 = arith.constant 0 : index
    %42 = vector.load %arg4[%c0_20, %c0_21] : memref<256x128xbf16, #tpu.memory_space<vmem>>, vector<256x128xbf16>
    %cst_22 = arith.constant dense<0.000000e+00> : vector<2x128xf32>
    %43 = tpu.matmul %41, %42, %cst_22 {dimension_numbers = #tpu.dot_dimension_numbers<[1], [0], [0], [1], [0, 0, 1, 1], [], []>} : vector<2x256xbf16>, vector<256x128xbf16>, vector<2x128xf32> -> vector<2x128xf32>
    %44 = vector.broadcast %5 : vector<1x128xf32> to vector<2x128xf32>
    %45 = arith.addf %43, %44 : vector<2x128xf32>
    %c0_23 = arith.constant 0 : index
    %c0_24 = arith.constant 0 : index
    %46 = vector.load %arg7[%c0_23, %c0_24] : memref<2x128xf32, #tpu.memory_space<vmem>>, vector<2x128xf32>
    tpu.vector_store %arg7[%c0_23, %c0_24], %45 {strides = array<i32>} : memref<2x128xf32, #tpu.memory_space<vmem>>, vector<2x128xf32>,
    return
  }
  func.func @transform_0(%arg0: i32) -> (i32, i32) {
    %c0_i32 = arith.constant 0 : i32
    %c0_i32_0 = arith.constant 0 : i32
    %c0_i32_1 = arith.constant 0 : i32
    return %c0_i32, %c0_i32_0 : i32, i32
  }
  func.func @transform_1(%arg0: i32) -> (i32, i32) {
    %c0_i32 = arith.constant 0 : i32
    %c0_i32_0 = arith.constant 0 : i32
    %c0_i32_1 = arith.constant 0 : i32
    return %c0_i32, %c0_i32_0 : i32, i32
  }
  func.func @transform_2(%arg0: i32) -> (i32, i32) {
    %c0_i32 = arith.constant 0 : i32
    %c0_i32_0 = arith.constant 0 : i32
    %c0_i32_1 = arith.constant 0 : i32
    return %c0_i32, %c0_i32_0 : i32, i32
  }
  func.func @transform_3(%arg0: i32) -> (i32, i32) {
    %c0_i32 = arith.constant 0 : i32
    %c0_i32_0 = arith.constant 0 : i32
    %c0_i32_1 = arith.constant 0 : i32
    return %c0_i32, %c0_i32_0 : i32, i32
  }
  func.func @transform_4(%arg0: i32) -> (i32, i32) {
    %c0_i32 = arith.constant 0 : i32
    %c0_i32_0 = arith.constant 0 : i32
    %c0_i32_1 = arith.constant 0 : i32
    return %c0_i32, %c0_i32_0 : i32, i32
  }
  func.func @transform_5(%arg0: i32) -> (i32, i32) {
    %c0_i32 = arith.constant 0 : i32
    %c0_i32_0 = arith.constant 0 : i32
    %c0_i32_1 = arith.constant 0 : i32
    return %c0_i32, %c0_i32_0 : i32, i32
  }
  func.func @transform_6(%arg0: i32) -> (i32, i32) {
    %c0_i32 = arith.constant 0 : i32
    %c0_i32_0 = arith.constant 0 : i32
    %c0_i32_1 = arith.constant 0 : i32
    return %c0_i32, %c0_i32_0 : i32, i32
  }
}

</mosaic_0001>

<bundles_post_ra>
// kernel: netwrapper_forward.1
= control target key start
LH: loop header
LB: loop body
LE: loop exit
PB: predicated region body
PF: predicated region fallthrough
CT: control target
= control target key end

     0   :  { %12 = vsyncpa [#allocation3], 0  ;;  %s4060_s0 = inlined_call_operand.vmem [shape: f32[2,1024], index: 0, kind: input, shape index: {}]   ;;  %s4061_s1 = inlined_call_operand.hbm [shape: bf16[1024,512], index: 1, kind: input, shape index: {}]   ;;  %s4062_s2 = inlined_call_operand.hbm [shape: bf16[512,256], index: 2, kind: input, shape index: {}]   ;;  %s4063_s3 = inlined_call_operand.vmem [shape: bf16[256,128], index: 3, kind: input, shape index: {}]   ;;  %s4064_s4 = inlined_call_operand.vmem [shape: f32[1,1152], index: 4, kind: input, shape index: {}]   ;;  %s4065_s5 = inlined_call_operand.hbm [shape: f32[2,512], index: 5, kind: output, shape index: {0}]   ;;  %s4066_s6 = inlined_call_operand.hbm [shape: f32[2,128], index: 6, kind: output, shape index: {1}]  }
   0x1   :  { %13 = vsyncpa [#allocation6], 0 }
   0x2   :  { %14 = vsyncpa [#allocation4], 0 }
   0x3   :  { %15 = vsyncpa [#allocation9], 0  ;;  %s3807_s21 = smov [#allocation2]   ;;  %s3711_s25 = scalar_lea.hbm %s4061_s1, 32768 }
   0x4   :  { %s23_s22 = sshll.u32 %s3807_s21, 4  ;;  %p3712_p0 = scmp.ne.s32.totalorder %s4061_s1, %s3711_s25  ;;  %s24_s22 = int_to_ptr.vmem [resolvable:$true] %s23_s22 }
   0x5   :  { %p3715_p1 = scmp.lt.u32.totalorder %s3711_s25, %s4061_s1 }
   0x7   :  { %p3717_p2 = pnand %p3715_p1, %p3712_p0 }
   0x9   :  { %3720 = shalt.err (!%p3717_p2)
}
   0xa   :  { %s3721_s30 = scalar_lea.vmem %s24_s22, 32768  ;;  %p3726_p4 = scmp.lt.s32.totalorder %s24_s22, %s24_s22 }
   0xb   :  { %p3722_p3 = scmp.ne.s32.totalorder %s24_s22, %s3721_s30  ;;  %p3727_p5 = scmp.lt.s32.totalorder %s3721_s30, %s3721_s30 }
   0xd   :  { %p3728_p6 = por %p3727_p5, %p3726_p4 }
   0xf   :  { %p3729_p7 = pnand %p3728_p6, %p3722_p3 }
  0x11   :  { %3732 = shalt.err (!%p3729_p7)
}
  0x12   :  { %s3808_s7 = smov 256   ;;  %s3809_s8 = smov 16  }
  0x13   :  { %29 = dma.hbm_to_vmem [thread:$0]  %s4061_s1, 32768, %s24_s22, [#allocation3], %s3808_s7, %s3808_s7, %s3809_s8  }
  0x14   :  { %s3810_s11 = smov [#allocation5]   ;;  %s3733_s15 = scalar_lea.hbm %s4062_s2, 8192 }
  0x15   :  { %s35_s12 = sshll.u32 %s3810_s11, 4  ;;  %p3734_p8 = scmp.ne.s32.totalorder %s4062_s2, %s3733_s15  ;;  %s36_s12 = int_to_ptr.vmem [resolvable:$true] %s35_s12 }
  0x16   :  { %p3737_p9 = scmp.lt.u32.totalorder %s3733_s15, %s4062_s2 }
  0x18   :  { %p3739_p10 = pnand %p3737_p9, %p3734_p8 }
  0x1a   :  { %3742 = shalt.err (!%p3739_p10)
}
  0x1b   :  { %s3743_s20 = scalar_lea.vmem %s36_s12, 8192  ;;  %p3748_p12 = scmp.lt.s32.totalorder %s36_s12, %s36_s12 }
  0x1c   :  { %p3744_p11 = scmp.ne.s32.totalorder %s36_s12, %s3743_s20  ;;  %p3749_p13 = scmp.lt.s32.totalorder %s3743_s20, %s3743_s20 }
  0x1e   :  { %p3750_p0 = por %p3749_p13, %p3748_p12 }
  0x20   :  { %p3751_p1 = pnand %p3750_p0, %p3744_p11 }
  0x22   :  { %3754 = shalt.err (!%p3751_p1)
}
  0x23   :  { %s3811_s1 = smov 128   ;;  %s3812_s21 = smov 8  }
  0x24   :  { %41 = dma.hbm_to_vmem [thread:$0]  %s4062_s2, 8192, %s36_s12, [#allocation6], %s3811_s1, %s3811_s1, %s3812_s21  }
  0x25   :  { %3799 = dma.done.wait [#allocation3], 32768  }
  0x26   :  { %3800 = vsyncadd [#allocation3], 4294934528 }
  0x27   :  { %3801 = dma.done.wait [#allocation6], 8192  }
  0x28   :  { %3802 = vsyncadd [#allocation6], 4294959104  ;;  %v3209_v0 = vld [vmem:[#allocation2 + $0x4] ss:$16 sps:$4 sm:$0xff]   ;;  %v3213_v2 = vld [vmem:[#allocation2] ss:$16 sps:$4 sm:$0xff]   ;;  %v61_v38 = vlaneseq }
  0x29   :  { %v3211_v1 = vld [vmem:[#allocation2 + $0x204] ss:$16 sps:$4 sm:$0xff]   ;;  %1668 = vmatprep.subr.bf16.mxu1 %v3209_v0  ;;  %v3214_v3 = vld [vmem:[#allocation2 + $0x200] ss:$16 sps:$4 sm:$0xff]   ;;  %v3813_v36 = vmov 1983009808  }
  0x2a   :  { %1709 = vmatprep.subr.bf16.mxu0 %v3211_v1  ;;  %v3215_v4 = vld [vmem:[#allocation2 + $0x24] ss:$16 sps:$4 sm:$0xff]   ;;  %1669 = vmatpush1.bf16.msra.mxu1 %v3213_v2  ;;  %v3219_v6 = vld [vmem:[#allocation2 + $0x20] ss:$16 sps:$4 sm:$0xff]   ;;  %v59_v37 = vunpack.c.l.s4 %v3813_v36  ;;  %v3876_v43 = vshrl.u32 %v61_v38, 7  ;;  %vm2493_vm0 = vcmask 1041408  }
  0x2b   :  { %1710 = vmatpush1.bf16.msra.mxu0 %v3214_v3  ;;  %v3217_v5 = vld [vmem:[#allocation2 + $0x224] ss:$16 sps:$4 sm:$0xff]   ;;  %1670 = vmatprep.subr.bf16.mxu1 %v3215_v4  ;;  %v3220_v7 = vld [vmem:[#allocation2 + $0x220] ss:$16 sps:$4 sm:$0xff]   ;;  %s3815_s12 = smov [#allocation7]  }
  0x2c   :  { %1711 = vmatprep.subr.bf16.mxu0 %v3217_v5  ;;  %v3221_v8 = vld [vmem:[#allocation2 + $0x44] ss:$16 sps:$4 sm:$0xff]   ;;  %v3225_v10 = vld [vmem:[#allocation2 + $0x40] ss:$16 sps:$4 sm:$0xff]   ;;  %v60_v42 = vunpack.c.0.s8 %v59_v37  ;;  %v3341_v37 = vld [vmem:[#allocation2 + $0xac] ss:$16 sps:$4 sm:$0xff]  }
  0x2d   :  { %v3223_v9 = vld [vmem:[#allocation2 + $0x244] ss:$16 sps:$4 sm:$0xff]   ;;  %v3226_v11 = vld [vmem:[#allocation2 + $0x240] ss:$16 sps:$4 sm:$0xff]   ;;  %s2786_s13 = sshll.u32 %s3815_s12, 4  ;;  %s2787_s13 = int_to_ptr.vmem [resolvable:$true] %s2786_s13 }
  0x2e   :  { %1671 = vmatpush1.bf16.msra.mxu1 %v3219_v6  ;;  %v3227_v12 = vld [vmem:[#allocation2 + $0x64] ss:$16 sps:$4 sm:$0xff]   ;;  %v3231_v14 = vld [vmem:[#allocation2 + $0x60] ss:$16 sps:$4 sm:$0xff]   ;;  %v3879_v49 = vsub.s32 %v60_v42, %v3876_v43  ;;  %v3898_v42 = vld [vmem:[%s4060_s0 + $0x8] sm:$0xff]  ;;  %s3755_s14 = scalar_lea.vmem %s2787_s13, 128  ;;  %p3760_p3 = scmp.lt.s32.totalorder %s2787_s13, %s2787_s13 }
  0x2f   :  { %1712 = vmatpush1.bf16.msra.mxu0 %v3220_v7  ;;  %1672 = vmatprep.subr.bf16.mxu1 %v3221_v8  ;;  %v3229_v13 = vld [vmem:[#allocation2 + $0x264] ss:$16 sps:$4 sm:$0xff]   ;;  %v3232_v15 = vld [vmem:[#allocation2 + $0x260] ss:$16 sps:$4 sm:$0xff]   ;;  %p3756_p2 = scmp.ne.s32.totalorder %s2787_s13, %s3755_s14  ;;  %p3761_p4 = scmp.lt.s32.totalorder %s3755_s14, %s3755_s14 }
  0x30   :  { %1713 = vmatprep.subr.bf16.mxu0 %v3223_v9  ;;  %v3233_v16 = vld [vmem:[#allocation2 + $0x84] ss:$16 sps:$4 sm:$0xff]   ;;  %v3237_v18 = vld [vmem:[#allocation2 + $0x80] ss:$16 sps:$4 sm:$0xff]  }
  0x31   :  { %v3235_v17 = vld [vmem:[#allocation2 + $0x284] ss:$16 sps:$4 sm:$0xff]   ;;  %v3238_v19 = vld [vmem:[#allocation2 + $0x280] ss:$16 sps:$4 sm:$0xff]   ;;  %p3762_p5 = por %p3761_p4, %p3760_p3 }
  0x32   :  { %1673 = vmatpush1.bf16.msra.mxu1 %v3225_v10  ;;  %v3239_v20 = vld [vmem:[#allocation2 + $0xa4] ss:$16 sps:$4 sm:$0xff]   ;;  %v3243_v22 = vld [vmem:[#allocation2 + $0xa0] ss:$16 sps:$4 sm:$0xff]  }
  0x33   :  { %1714 = vmatpush1.bf16.msra.mxu0 %v3226_v11  ;;  %1674 = vmatprep.subr.bf16.mxu1 %v3227_v12  ;;  %v3241_v21 = vld [vmem:[#allocation2 + $0x2a4] ss:$16 sps:$4 sm:$0xff]   ;;  %v3244_v23 = vld [vmem:[#allocation2 + $0x2a0] ss:$16 sps:$4 sm:$0xff]   ;;  %p3763_p6 = pnand %p3762_p5, %p3756_p2 }
  0x34   :  { %1715 = vmatprep.subr.bf16.mxu0 %v3229_v13  ;;  %v3245_v24 = vld [vmem:[#allocation2 + $0xc4] ss:$16 sps:$4 sm:$0xff]   ;;  %v3249_v26 = vld [vmem:[#allocation2 + $0xc0] ss:$16 sps:$4 sm:$0xff]  }
  0x35   :  { %v3247_v25 = vld [vmem:[#allocation2 + $0x2c4] ss:$16 sps:$4 sm:$0xff]   ;;  %v3250_v27 = vld [vmem:[#allocation2 + $0x2c0] ss:$16 sps:$4 sm:$0xff]  }
  0x36   :  { %1675 = vmatpush1.bf16.msra.mxu1 %v3231_v14  ;;  %v3251_v28 = vld [vmem:[#allocation2 + $0xe4] ss:$16 sps:$4 sm:$0xff]   ;;  %v3255_v30 = vld [vmem:[#allocation2 + $0xe0] ss:$16 sps:$4 sm:$0xff]  }
  0x37   :  { %1716 = vmatpush1.bf16.msra.mxu0 %v3232_v15  ;;  %1676 = vmatprep.subr.bf16.mxu1 %v3233_v16  ;;  %v3253_v29 = vld [vmem:[#allocation2 + $0x2e4] ss:$16 sps:$4 sm:$0xff]   ;;  %v3256_v31 = vld [vmem:[#allocation2 + $0x2e0] ss:$16 sps:$4 sm:$0xff]   ;;  %v3311_v15 = vld [vmem:[#allocation2 + $0xc] ss:$16 sps:$4 sm:$0xff]  }
  0x38   :  { %1717 = vmatprep.subr.bf16.mxu0 %v3235_v17  ;;  %v3257_v32 = vld [vmem:[#allocation2 + $0x104] ss:$16 sps:$4 sm:$0xff]   ;;  %v3261_v34 = vld [vmem:[#allocation2 + $0x100] ss:$16 sps:$4 sm:$0xff]  }
  0x39   :  { %v3259_v33 = vld [vmem:[#allocation2 + $0x304] ss:$16 sps:$4 sm:$0xff]   ;;  %v3262_v35 = vld [vmem:[#allocation2 + $0x300] ss:$16 sps:$4 sm:$0xff]  }
  0x3a   :  { %1677 = vmatpush1.bf16.msra.mxu1 %v3237_v18  ;;  %v3263_v39 = vld [vmem:[#allocation2 + $0x124] ss:$16 sps:$4 sm:$0xff]   ;;  %v3267_v41 = vld [vmem:[#allocation2 + $0x120] ss:$16 sps:$4 sm:$0xff]  }
  0x3b   :  { %1718 = vmatpush1.bf16.msra.mxu0 %v3238_v19  ;;  %1678 = vmatprep.subr.bf16.mxu1 %v3239_v20  ;;  %v3265_v40 = vld [vmem:[#allocation2 + $0x324] ss:$16 sps:$4 sm:$0xff]   ;;  %v3268_v44 = vld [vmem:[#allocation2 + $0x320] ss:$16 sps:$4 sm:$0xff]   ;;  %v3309_v19 = vld [vmem:[#allocation2 + $0x8] ss:$16 sps:$4 sm:$0xff]  }
  0x3c   :  { %1719 = vmatprep.subr.bf16.mxu0 %v3241_v21  ;;  %v3269_v45 = vld [vmem:[#allocation2 + $0x144] ss:$16 sps:$4 sm:$0xff]   ;;  %v3273_v47 = vld [vmem:[#allocation2 + $0x140] ss:$16 sps:$4 sm:$0xff]   ;;  %v3317_v21 = vld [vmem:[#allocation2 + $0x2c] ss:$16 sps:$4 sm:$0xff]  }
  0x3d   :  { %v3271_v46 = vld [vmem:[#allocation2 + $0x344] ss:$16 sps:$4 sm:$0xff]   ;;  %v3274_v48 = vld [vmem:[#allocation2 + $0x340] ss:$16 sps:$4 sm:$0xff]  }
  0x3e   :  { %1679 = vmatpush1.bf16.msra.mxu1 %v3243_v22  ;;  %v3275_v50 = vld [vmem:[#allocation2 + $0x164] ss:$16 sps:$4 sm:$0xff]   ;;  %v3279_v53 = vld [vmem:[#allocation2 + $0x160] ss:$16 sps:$4 sm:$0xff]  }
  0x3f   :  { %1720 = vmatpush1.bf16.msra.mxu0 %v3244_v23  ;;  %1680 = vmatprep.subr.bf16.mxu1 %v3245_v24  ;;  %v3277_v51 = vld [vmem:[#allocation2 + $0x364] ss:$16 sps:$4 sm:$0xff]   ;;  %v3280_v56 = vld [vmem:[#allocation2 + $0x360] ss:$16 sps:$4 sm:$0xff]   ;;  %v3315_v23 = vld [vmem:[#allocation2 + $0x28] ss:$16 sps:$4 sm:$0xff]  }
  0x40   :  { %1721 = vmatprep.subr.bf16.mxu0 %v3247_v25  ;;  %v53_v52 = vld [vmem:[%s4060_s0] sm:$0xff]  ;;  %v3323_v25 = vld [vmem:[#allocation2 + $0x4c] ss:$16 sps:$4 sm:$0xff]  }
  0x41   :  { %v64_v54 = vrot.slane %v53_v52, %v3879_v49  ;;  %v57_v55 = vcombine.high %v53_v52, %v53_v52  ;;  %v3281_v57 = vld [vmem:[#allocation2 + $0x184] ss:$16 sps:$4 sm:$0xff]   ;;  %v3285_v61 = vld [vmem:[#allocation2 + $0x180] ss:$16 sps:$4 sm:$0xff]  }
  0x42   :  { %1681 = vmatpush1.bf16.msra.mxu1 %v3249_v26  ;;  %v3283_v58 = vld [vmem:[#allocation2 + $0x384] ss:$16 sps:$4 sm:$0xff]   ;;  %v3286_v0 = vld [vmem:[#allocation2 + $0x380] ss:$16 sps:$4 sm:$0xff]  }
  0x43   :  { %1722 = vmatpush1.bf16.msra.mxu0 %v3250_v27  ;;  %1682 = vmatprep.subr.bf16.mxu1 %v3251_v28  ;;  %v72_v59 = vcombine.high %v64_v54, %v64_v54  ;;  %v71_v60 = vrot.slane %v57_v55, %v3879_v49  ;;  %v3287_v1 = vld [vmem:[#allocation2 + $0x1a4] ss:$16 sps:$4 sm:$0xff]   ;;  %v3291_v4 = vld [vmem:[#allocation2 + $0x1a0] ss:$16 sps:$4 sm:$0xff]   ;;  %v3889_v16 = vpack.c.bf16 %v64_v54, %v64_v54  ;;  %v3321_v27 = vld [vmem:[#allocation2 + $0x48] ss:$16 sps:$4 sm:$0xff]  }
  0x44   :  { %1723 = vmatprep.subr.bf16.mxu0 %v3253_v29  ;;  %v3289_v2 = vld [vmem:[#allocation2 + $0x3a4] ss:$16 sps:$4 sm:$0xff]   ;;  %v3292_v5 = vld [vmem:[#allocation2 + $0x3a0] ss:$16 sps:$4 sm:$0xff]   ;;  %v3329_v29 = vld [vmem:[#allocation2 + $0x6c] ss:$16 sps:$4 sm:$0xff]  }
  0x45   :  { %v100_v62 = vpack.c.bf16 %v72_v59, %v72_v59  ;;  %v73_v63 = vcombine.high %v71_v60, %v71_v60  ;;  %v3293_v6 = vld [vmem:[#allocation2 + $0x1c4] ss:$16 sps:$4 sm:$0xff]   ;;  %v3297_v8 = vld [vmem:[#allocation2 + $0x1c0] ss:$16 sps:$4 sm:$0xff]   ;;  %v3891_v18 = vpack.c.bf16 %v71_v60, %v71_v60  ;;  %v3359_v55 = vld [vmem:[#allocation2 + $0x10c] ss:$16 sps:$4 sm:$0xff]  }
  0x46   :  { %1683 = vmatpush1.bf16.msra.mxu1 %v3255_v30  ;;  %v3295_v7 = vld [vmem:[#allocation2 + $0x3c4] ss:$16 sps:$4 sm:$0xff]   ;;  %v3298_v9 = vld [vmem:[#allocation2 + $0x3c0] ss:$16 sps:$4 sm:$0xff]   ;;  %v3365_v59 = vld [vmem:[#allocation2 + $0x12c] ss:$16 sps:$4 sm:$0xff]  }
  0x47   :  { %1724 = vmatpush1.bf16.msra.mxu0 %v3256_v31  ;;  %1684 = vmatprep.subr.bf16.mxu1 %v3257_v32  ;;  %v3886_v3 = vpack.c.bf16 %v73_v63, %v73_v63  ;;  %v3299_v10 = vld [vmem:[#allocation2 + $0x1e4] ss:$16 sps:$4 sm:$0xff]   ;;  %v3303_v12 = vld [vmem:[#allocation2 + $0x1e0] ss:$16 sps:$4 sm:$0xff]   ;;  %v3327_v31 = vld [vmem:[#allocation2 + $0x68] ss:$16 sps:$4 sm:$0xff]  }
  0x48   :  { %1725 = vmatprep.subr.bf16.mxu0 %v3259_v33  ;;  %1700 = vmatprep.mubr.bf16.mxu1 %v100_v62  ;;  %v3301_v11 = vld [vmem:[#allocation2 + $0x3e4] ss:$16 sps:$4 sm:$0xff]   ;;  %v3304_v13 = vld [vmem:[#allocation2 + $0x3e0] ss:$16 sps:$4 sm:$0xff]   ;;  %v3335_v33 = vld [vmem:[#allocation2 + $0x8c] ss:$16 sps:$4 sm:$0xff]  }
  0x49   :  { %1741 = vmatprep.mubr.bf16.mxu0 %v3886_v3  ;;  %v3308_v14 = vld [vmem:[#allocation2 + $0x404] ss:$16 sps:$4 sm:$0xff]   ;;  %v3306_v17 = vld [vmem:[#allocation2 + $0x400] ss:$16 sps:$4 sm:$0xff]   ;;  %v3371_v63 = vld [vmem:[#allocation2 + $0x14c] ss:$16 sps:$4 sm:$0xff]  }
  0x4a   :  { %1685 = vmatpush1.bf16.msra.mxu1 %v3261_v34  ;;  %v3314_v20 = vld [vmem:[#allocation2 + $0x424] ss:$16 sps:$4 sm:$0xff]   ;;  %v3312_v22 = vld [vmem:[#allocation2 + $0x420] ss:$16 sps:$4 sm:$0xff]  }
  0x4b   :  { %1726 = vmatpush1.bf16.msra.mxu0 %v3262_v35  ;;  %1686 = vmatprep.subr.bf16.mxu1 %v3263_v39  ;;  %v3320_v24 = vld [vmem:[#allocation2 + $0x444] ss:$16 sps:$4 sm:$0xff]   ;;  %v3318_v26 = vld [vmem:[#allocation2 + $0x440] ss:$16 sps:$4 sm:$0xff]   ;;  %v3333_v35 = vld [vmem:[#allocation2 + $0x88] ss:$16 sps:$4 sm:$0xff]  }
  0x4c   :  { %1727 = vmatprep.subr.bf16.mxu0 %v3265_v40  ;;  %v3326_v28 = vld [vmem:[#allocation2 + $0x464] ss:$16 sps:$4 sm:$0xff]   ;;  %v3324_v30 = vld [vmem:[#allocation2 + $0x460] ss:$16 sps:$4 sm:$0xff]   ;;  %v3339_v39 = vld [vmem:[#allocation2 + $0xa8] ss:$16 sps:$4 sm:$0xff]  }
  0x4d   :  { %v3332_v32 = vld [vmem:[#allocation2 + $0x484] ss:$16 sps:$4 sm:$0xff]   ;;  %v3330_v34 = vld [vmem:[#allocation2 + $0x480] ss:$16 sps:$4 sm:$0xff]  }
  0x4e   :  { %1687 = vmatpush1.bf16.msra.mxu1 %v3267_v41  ;;  %v3338_v36 = vld [vmem:[#allocation2 + $0x4a4] ss:$16 sps:$4 sm:$0xff]   ;;  %v3336_v38 = vld [vmem:[#allocation2 + $0x4a0] ss:$16 sps:$4 sm:$0xff]   ;;  %v3347_v41 = vld [vmem:[#allocation2 + $0xcc] ss:$16 sps:$4 sm:$0xff]  }
  0x4f   :  { %1728 = vmatpush1.bf16.msra.mxu0 %v3268_v44  ;;  %1688 = vmatprep.subr.bf16.mxu1 %v3269_v45  ;;  %v3344_v40 = vld [vmem:[#allocation2 + $0x4c4] ss:$16 sps:$4 sm:$0xff]   ;;  %v3902_v44 = vrot.slane %v3898_v42, %v3879_v49  ;;  %v3342_v45 = vld [vmem:[#allocation2 + $0x4c0] ss:$16 sps:$4 sm:$0xff]  }
  0x50   :  { %1729 = vmatprep.subr.bf16.mxu0 %v3271_v46  ;;  %v3345_v46 = vld [vmem:[#allocation2 + $0xc8] ss:$16 sps:$4 sm:$0xff]   ;;  %v3348_v52 = vld [vmem:[#allocation2 + $0x4e0] ss:$16 sps:$4 sm:$0xff]   ;;  %v3356_v54 = vld [vmem:[#allocation2 + $0x504] ss:$16 sps:$4 sm:$0xff]  }
  0x51   :  { %v3360_v60 = vld [vmem:[#allocation2 + $0x520] ss:$16 sps:$4 sm:$0xff]  }
  0x52   :  { %1689 = vmatpush1.bf16.msra.mxu1 %v3273_v47  ;;  %v89_v47 = vcombine.high %v3902_v44, %v3902_v44 }
  0x53   :  { %1730 = vmatpush1.bf16.msra.mxu0 %v3274_v48  ;;  %1690 = vmatprep.subr.bf16.mxu1 %v3275_v50  ;;  %v3350_v48 = vld [vmem:[#allocation2 + $0x4e4] ss:$16 sps:$4 sm:$0xff]   ;;  %v3353_v50 = vld [vmem:[#allocation2 + $0xec] ss:$16 sps:$4 sm:$0xff]  }
  0x54   :  { %1731 = vmatprep.subr.bf16.mxu0 %v3277_v51  ;;  %v3906_v51 = vpack.c.bf16 %v89_v47, %v89_v47  ;;  %v3431_v47 = vld [vmem:[#allocation2 + $0x28c] ss:$16 sps:$4 sm:$0xff]  }
  0x56   :  { %1691 = vmatpush1.bf16.msra.mxu1 %v3279_v53  ;;  %v3351_v53 = vld [vmem:[#allocation2 + $0xe8] ss:$16 sps:$4 sm:$0xff]  }
  0x57   :  { %1732 = vmatpush1.bf16.msra.mxu0 %v3280_v56  ;;  %1692 = vmatprep.subr.bf16.mxu1 %v3281_v57  ;;  %v3354_v56 = vld [vmem:[#allocation2 + $0x500] ss:$16 sps:$4 sm:$0xff]   ;;  %v3357_v57 = vld [vmem:[#allocation2 + $0x108] ss:$16 sps:$4 sm:$0xff]  }
  0x58   :  { %1733 = vmatprep.subr.bf16.mxu0 %v3283_v58  ;;  %v3362_v58 = vld [vmem:[#allocation2 + $0x524] ss:$16 sps:$4 sm:$0xff]  }
  0x5a   :  { %1693 = vmatpush1.bf16.msra.mxu1 %v3285_v61  ;;  %v3363_v61 = vld [vmem:[#allocation2 + $0x128] ss:$16 sps:$4 sm:$0xff]  }
  0x5b   :  { %1734 = vmatpush1.bf16.msra.mxu0 %v3286_v0  ;;  %1694 = vmatprep.subr.bf16.mxu1 %v3287_v1  ;;  %v3366_v0 = vld [vmem:[#allocation2 + $0x540] ss:$16 sps:$4 sm:$0xff]   ;;  %v3369_v1 = vld [vmem:[#allocation2 + $0x148] ss:$16 sps:$4 sm:$0xff]  }
  0x5c   :  { %1735 = vmatprep.subr.bf16.mxu0 %v3289_v2  ;;  %v3374_v2 = vld [vmem:[#allocation2 + $0x564] ss:$16 sps:$4 sm:$0xff]  }
  0x5e   :  { %1695 = vmatpush1.bf16.msra.mxu1 %v3291_v4  ;;  %v3377_v4 = vld [vmem:[#allocation2 + $0x16c] ss:$16 sps:$4 sm:$0xff]  }
  0x5f   :  { %1736 = vmatpush1.bf16.msra.mxu0 %v3292_v5  ;;  %1696 = vmatprep.subr.bf16.mxu1 %v3293_v6  ;;  %v3372_v5 = vld [vmem:[#allocation2 + $0x560] ss:$16 sps:$4 sm:$0xff]   ;;  %v3375_v6 = vld [vmem:[#allocation2 + $0x168] ss:$16 sps:$4 sm:$0xff]  }
  0x60   :  { %1737 = vmatprep.subr.bf16.mxu0 %v3295_v7  ;;  %v3380_v7 = vld [vmem:[#allocation2 + $0x584] ss:$16 sps:$4 sm:$0xff]  }
  0x62   :  { %1697 = vmatpush1.bf16.msra.mxu1 %v3297_v8  ;;  %v3383_v8 = vld [vmem:[#allocation2 + $0x18c] ss:$16 sps:$4 sm:$0xff]  }
  0x63   :  { %1738 = vmatpush1.bf16.msra.mxu0 %v3298_v9  ;;  %1698 = vmatprep.subr.bf16.mxu1 %v3299_v10  ;;  %v3378_v9 = vld [vmem:[#allocation2 + $0x580] ss:$16 sps:$4 sm:$0xff]   ;;  %v3381_v10 = vld [vmem:[#allocation2 + $0x188] ss:$16 sps:$4 sm:$0xff]  }
  0x64   :  { %1739 = vmatprep.subr.bf16.mxu0 %v3301_v11  ;;  %v3386_v11 = vld [vmem:[#allocation2 + $0x5a4] ss:$16 sps:$4 sm:$0xff]  }
  0x66   :  { %1699 = vmatpush1.bf16.msra.mxu1 %v3303_v12  ;;  %v3389_v12 = vld [vmem:[#allocation2 + $0x1ac] ss:$16 sps:$4 sm:$0xff]  }
  0x67   :  { %1740 = vmatpush1.bf16.msra.mxu0 %v3304_v13  ;;  %1832 = vmatprep.subr.bf16.mxu1 %v3311_v15  ;;  %v3384_v13 = vld [vmem:[#allocation2 + $0x5a0] ss:$16 sps:$4 sm:$0xff]   ;;  %v3392_v15 = vld [vmem:[#allocation2 + $0x5c4] ss:$16 sps:$4 sm:$0xff]  }
  0x68   :  { %1750 = vmatprep.subr.bf16.mxu0 %v3308_v14  ;;  %v3387_v14 = vld [vmem:[#allocation2 + $0x1a8] ss:$16 sps:$4 sm:$0xff]  }
  0x69   :  { %1701 = vmatmul.mubr.bf16.vlgmr.msra.gmra.mrb[0].mxu1 %v3889_v16 }
  0x6a   :  { %1742 = vmatmul.mubr.bf16.vlgmr.msra.gmra.mrb[0].mxu0 %v3891_v18  ;;  %1833 = vmatpush1.bf16.msra.mxu1 %v3309_v19  ;;  %v74_v19 = vcombine.high %v3898_v42, %v3898_v42  ;;  %v3422_v42 = vld [vmem:[#allocation2 + $0x664] ss:$16 sps:$4 sm:$0xff]  }
  0x6b   :  { %1751 = vmatpush1.bf16.msra.mxu0 %v3306_v17  ;;  %1834 = vmatprep.subr.bf16.mxu1 %v3317_v21  ;;  %v3395_v17 = vld [vmem:[#allocation2 + $0x1cc] ss:$16 sps:$4 sm:$0xff]   ;;  %v3393_v21 = vld [vmem:[#allocation2 + $0x1c8] ss:$16 sps:$4 sm:$0xff]  }
  0x6c   :  { %1752 = vmatprep.subr.bf16.mxu0 %v3314_v20  ;;  %1864 = vmatprep.mubr.bf16.mxu1 %v100_v62  ;;  %v3368_v62 = vld [vmem:[#allocation2 + $0x544] ss:$16 sps:$4 sm:$0xff]   ;;  %v3390_v20 = vld [vmem:[#allocation2 + $0x5c0] ss:$16 sps:$4 sm:$0xff]  }
  0x6d   :  { %1782 = vmatprep.mubr.bf16.mxu0 %v3906_v51 }
  0x6e   :  { %1835 = vmatpush1.bf16.msra.mxu1 %v3315_v23  ;;  %v3401_v23 = vld [vmem:[#allocation2 + $0x1ec] ss:$16 sps:$4 sm:$0xff]  }
  0x6f   :  { %1753 = vmatpush1.bf16.msra.mxu0 %v3312_v22  ;;  %1836 = vmatprep.subr.bf16.mxu1 %v3323_v25  ;;  %v3398_v22 = vld [vmem:[#allocation2 + $0x5e4] ss:$16 sps:$4 sm:$0xff]   ;;  %v3396_v25 = vld [vmem:[#allocation2 + $0x5e0] ss:$16 sps:$4 sm:$0xff]  }
  0x70   :  { %1754 = vmatprep.subr.bf16.mxu0 %v3320_v24  ;;  %v3912_v24 = vrot.slane %v74_v19, %v3879_v49  ;;  %v3479_v19 = vld [vmem:[#allocation2 + $0x38c] ss:$16 sps:$4 sm:$0xff]  }
  0x72   :  { %1837 = vmatpush1.bf16.msra.mxu1 %v3321_v27  ;;  %v3404_v27 = vld [vmem:[#allocation2 + $0x604] ss:$16 sps:$4 sm:$0xff]  }
  0x73   :  { %1755 = vmatpush1.bf16.msra.mxu0 %v3318_v26  ;;  %1838 = vmatprep.subr.bf16.mxu1 %v3329_v29  ;;  %v3399_v26 = vld [vmem:[#allocation2 + $0x1e8] ss:$16 sps:$4 sm:$0xff]   ;;  %v90_v29 = vcombine.high %v3912_v24, %v3912_v24 }
  0x74   :  { %1756 = vmatprep.subr.bf16.mxu0 %v3326_v28  ;;  %v3407_v28 = vld [vmem:[#allocation2 + $0x20c] ss:$16 sps:$4 sm:$0xff]  }
  0x76   :  { %1839 = vmatpush1.bf16.msra.mxu1 %v3327_v31  ;;  %v3402_v31 = vld [vmem:[#allocation2 + $0x600] ss:$16 sps:$4 sm:$0xff]  }
  0x77   :  { %1757 = vmatpush1.bf16.msra.mxu0 %v3324_v30  ;;  %1840 = vmatprep.subr.bf16.mxu1 %v3335_v33  ;;  %v3918_v30 = vpack.c.bf16 %v3902_v44, %v3902_v44  ;;  %v3410_v33 = vld [vmem:[#allocation2 + $0x624] ss:$16 sps:$4 sm:$0xff]   ;;  %v3420_v44 = vld [vmem:[#allocation2 + $0x660] ss:$16 sps:$4 sm:$0xff]  }
  0x78   :  { %1758 = vmatprep.subr.bf16.mxu0 %v3332_v32  ;;  %v3405_v32 = vld [vmem:[#allocation2 + $0x208] ss:$16 sps:$4 sm:$0xff]  }
  0x7a   :  { %1841 = vmatpush1.bf16.msra.mxu1 %v3333_v35  ;;  %v3920_v35 = vpack.c.bf16 %v90_v29, %v90_v29  ;;  %v3486_v29 = vld [vmem:[#allocation2 + $0x7c0] ss:$16 sps:$4 sm:$0xff]  }
  0x7b   :  { %1759 = vmatpush1.bf16.msra.mxu0 %v3330_v34  ;;  %1842 = vmatprep.subr.bf16.mxu1 %v3341_v37  ;;  %v3413_v34 = vld [vmem:[#allocation2 + $0x22c] ss:$16 sps:$4 sm:$0xff]   ;;  %v3411_v37 = vld [vmem:[#allocation2 + $0x228] ss:$16 sps:$4 sm:$0xff]  }
  0x7c   :  { %1760 = vmatprep.subr.bf16.mxu0 %v3338_v36  ;;  %v3408_v36 = vld [vmem:[#allocation2 + $0x620] ss:$16 sps:$4 sm:$0xff]  }
  0x7e   :  { %1843 = vmatpush1.bf16.msra.mxu1 %v3339_v39  ;;  %v3419_v39 = vld [vmem:[#allocation2 + $0x24c] ss:$16 sps:$4 sm:$0xff]  }
  0x7f   :  { %1761 = vmatpush1.bf16.msra.mxu0 %v3336_v38  ;;  %1844 = vmatprep.subr.bf16.mxu1 %v3347_v41  ;;  %v3416_v38 = vld [vmem:[#allocation2 + $0x644] ss:$16 sps:$4 sm:$0xff]   ;;  %v3417_v41 = vld [vmem:[#allocation2 + $0x248] ss:$16 sps:$4 sm:$0xff]  }
  0x80   :  { %1762 = vmatprep.subr.bf16.mxu0 %v3344_v40  ;;  %v3414_v40 = vld [vmem:[#allocation2 + $0x640] ss:$16 sps:$4 sm:$0xff]  }
  0x82   :  { %1845 = vmatpush1.bf16.msra.mxu1 %v3345_v46  ;;  %v3428_v46 = vld [vmem:[#allocation2 + $0x684] ss:$16 sps:$4 sm:$0xff]  }
  0x83   :  { %1763 = vmatpush1.bf16.msra.mxu0 %v3342_v45  ;;  %1846 = vmatprep.subr.bf16.mxu1 %v3353_v50  ;;  %v3423_v45 = vld [vmem:[#allocation2 + $0x268] ss:$16 sps:$4 sm:$0xff]   ;;  %v3434_v50 = vld [vmem:[#allocation2 + $0x6a4] ss:$16 sps:$4 sm:$0xff]  }
  0x84   :  { %1764 = vmatprep.subr.bf16.mxu0 %v3350_v48  ;;  %v3426_v48 = vld [vmem:[#allocation2 + $0x680] ss:$16 sps:$4 sm:$0xff]  }
  0x86   :  { %1847 = vmatpush1.bf16.msra.mxu1 %v3351_v53  ;;  %v3432_v53 = vld [vmem:[#allocation2 + $0x6a0] ss:$16 sps:$4 sm:$0xff]  }
  0x87   :  { %1765 = vmatpush1.bf16.msra.mxu0 %v3348_v52  ;;  %1848 = vmatprep.subr.bf16.mxu1 %v3359_v55  ;;  %v3437_v52 = vld [vmem:[#allocation2 + $0x2ac] ss:$16 sps:$4 sm:$0xff]   ;;  %v3440_v55 = vld [vmem:[#allocation2 + $0x6c4] ss:$16 sps:$4 sm:$0xff]  }
  0x88   :  { %1766 = vmatprep.subr.bf16.mxu0 %v3356_v54  ;;  %v3435_v54 = vld [vmem:[#allocation2 + $0x2a8] ss:$16 sps:$4 sm:$0xff]  }
  0x8a   :  { %1849 = vmatpush1.bf16.msra.mxu1 %v3357_v57  ;;  %v3438_v57 = vld [vmem:[#allocation2 + $0x6c0] ss:$16 sps:$4 sm:$0xff]  }
  0x8b   :  { %1767 = vmatpush1.bf16.msra.mxu0 %v3354_v56  ;;  %1850 = vmatprep.subr.bf16.mxu1 %v3365_v59  ;;  %v3443_v56 = vld [vmem:[#allocation2 + $0x2cc] ss:$16 sps:$4 sm:$0xff]   ;;  %v3446_v59 = vld [vmem:[#allocation2 + $0x6e4] ss:$16 sps:$4 sm:$0xff]  }
  0x8c   :  { %1768 = vmatprep.subr.bf16.mxu0 %v3362_v58  ;;  %v3441_v58 = vld [vmem:[#allocation2 + $0x2c8] ss:$16 sps:$4 sm:$0xff]  }
  0x8e   :  { %1851 = vmatpush1.bf16.msra.mxu1 %v3363_v61  ;;  %v3444_v61 = vld [vmem:[#allocation2 + $0x6e0] ss:$16 sps:$4 sm:$0xff]  }
  0x8f   :  { %1769 = vmatpush1.bf16.msra.mxu0 %v3360_v60  ;;  %1852 = vmatprep.subr.bf16.mxu1 %v3371_v63  ;;  %v3449_v60 = vld [vmem:[#allocation2 + $0x2ec] ss:$16 sps:$4 sm:$0xff]   ;;  %v3452_v63 = vld [vmem:[#allocation2 + $0x704] ss:$16 sps:$4 sm:$0xff]  }
  0x90   :  { %1770 = vmatprep.subr.bf16.mxu0 %v3368_v62  ;;  %v3447_v62 = vld [vmem:[#allocation2 + $0x2e8] ss:$16 sps:$4 sm:$0xff]  }
  0x92   :  { %1853 = vmatpush1.bf16.msra.mxu1 %v3369_v1  ;;  %v3450_v1 = vld [vmem:[#allocation2 + $0x700] ss:$16 sps:$4 sm:$0xff]  }
  0x93   :  { %1771 = vmatpush1.bf16.msra.mxu0 %v3366_v0  ;;  %1854 = vmatprep.subr.bf16.mxu1 %v3377_v4  ;;  %v3455_v0 = vld [vmem:[#allocation2 + $0x30c] ss:$16 sps:$4 sm:$0xff]   ;;  %v3458_v4 = vld [vmem:[#allocation2 + $0x724] ss:$16 sps:$4 sm:$0xff]  }
  0x94   :  { %1772 = vmatprep.subr.bf16.mxu0 %v3374_v2  ;;  %v3453_v2 = vld [vmem:[#allocation2 + $0x308] ss:$16 sps:$4 sm:$0xff]  }
  0x96   :  { %1855 = vmatpush1.bf16.msra.mxu1 %v3375_v6  ;;  %v3456_v6 = vld [vmem:[#allocation2 + $0x720] ss:$16 sps:$4 sm:$0xff]  }
  0x97   :  { %1773 = vmatpush1.bf16.msra.mxu0 %v3372_v5  ;;  %1856 = vmatprep.subr.bf16.mxu1 %v3383_v8  ;;  %v3461_v5 = vld [vmem:[#allocation2 + $0x32c] ss:$16 sps:$4 sm:$0xff]   ;;  %v3464_v8 = vld [vmem:[#allocation2 + $0x744] ss:$16 sps:$4 sm:$0xff]  }
  0x98   :  { %1774 = vmatprep.subr.bf16.mxu0 %v3380_v7  ;;  %v3459_v7 = vld [vmem:[#allocation2 + $0x328] ss:$16 sps:$4 sm:$0xff]  }
  0x9a   :  { %1857 = vmatpush1.bf16.msra.mxu1 %v3381_v10  ;;  %v3462_v10 = vld [vmem:[#allocation2 + $0x740] ss:$16 sps:$4 sm:$0xff]  }
  0x9b   :  { %1775 = vmatpush1.bf16.msra.mxu0 %v3378_v9  ;;  %1858 = vmatprep.subr.bf16.mxu1 %v3389_v12  ;;  %v3467_v9 = vld [vmem:[#allocation2 + $0x34c] ss:$16 sps:$4 sm:$0xff]   ;;  %v3470_v12 = vld [vmem:[#allocation2 + $0x764] ss:$16 sps:$4 sm:$0xff]  }
  0x9c   :  { %1776 = vmatprep.subr.bf16.mxu0 %v3386_v11  ;;  %v3465_v11 = vld [vmem:[#allocation2 + $0x348] ss:$16 sps:$4 sm:$0xff]  }
  0x9e   :  { %1859 = vmatpush1.bf16.msra.mxu1 %v3387_v14  ;;  %v3468_v14 = vld [vmem:[#allocation2 + $0x760] ss:$16 sps:$4 sm:$0xff]  }
  0x9f   :  { %1777 = vmatpush1.bf16.msra.mxu0 %v3384_v13  ;;  %1860 = vmatprep.subr.bf16.mxu1 %v3395_v17  ;;  %v3473_v13 = vld [vmem:[#allocation2 + $0x36c] ss:$16 sps:$4 sm:$0xff]   ;;  %v3476_v17 = vld [vmem:[#allocation2 + $0x784] ss:$16 sps:$4 sm:$0xff]  }
  0xa0   :  { %1778 = vmatprep.subr.bf16.mxu0 %v3392_v15  ;;  %v3471_v15 = vld [vmem:[#allocation2 + $0x368] ss:$16 sps:$4 sm:$0xff]  }
  0xa2   :  { %1861 = vmatpush1.bf16.msra.mxu1 %v3393_v21  ;;  %v3477_v21 = vld [vmem:[#allocation2 + $0x388] ss:$16 sps:$4 sm:$0xff]  }
  0xa3   :  { %1779 = vmatpush1.bf16.msra.mxu0 %v3390_v20  ;;  %1862 = vmatprep.subr.bf16.mxu1 %v3401_v23  ;;  %v3474_v20 = vld [vmem:[#allocation2 + $0x780] ss:$16 sps:$4 sm:$0xff]   ;;  %v3485_v23 = vld [vmem:[#allocation2 + $0x3ac] ss:$16 sps:$4 sm:$0xff]  }
  0xa4   :  { %1780 = vmatprep.subr.bf16.mxu0 %v3398_v22  ;;  %v3482_v22 = vld [vmem:[#allocation2 + $0x7a4] ss:$16 sps:$4 sm:$0xff]  }
  0xa6   :  { %1863 = vmatpush1.bf16.msra.mxu1 %v3399_v26  ;;  %v3483_v26 = vld [vmem:[#allocation2 + $0x3a8] ss:$16 sps:$4 sm:$0xff]  }
  0xa7   :  { %1781 = vmatpush1.bf16.msra.mxu0 %v3396_v25  ;;  %1873 = vmatprep.subr.bf16.mxu1 %v3407_v28  ;;  %v3480_v25 = vld [vmem:[#allocation2 + $0x7a0] ss:$16 sps:$4 sm:$0xff]   ;;  %v3491_v28 = vld [vmem:[#allocation2 + $0x3cc] ss:$16 sps:$4 sm:$0xff]  }
  0xa8   :  { %1791 = vmatprep.subr.bf16.mxu0 %v3404_v27  ;;  %v3488_v27 = vld [vmem:[#allocation2 + $0x7c4] ss:$16 sps:$4 sm:$0xff]  }
  0xa9   :  { %1865 = vmatmul.mubr.bf16.vlgmr.msra.gmra.mrb[4].mxu1 %v3889_v16  ;;  %v3425_v16 = vld [vmem:[#allocation2 + $0x26c] ss:$16 sps:$4 sm:$0xff]  }
  0xaa   :  { %1783 = vmatmul.mubr.bf16.vlgmr.msra.gmra.mrb[0].mxu0 %v3918_v30  ;;  %1874 = vmatpush1.bf16.msra.mxu1 %v3405_v32  ;;  %v3494_v32 = vld [vmem:[#allocation2 + $0x7e4] ss:$16 sps:$4 sm:$0xff]  }
  0xab   :  { %1792 = vmatpush1.bf16.msra.mxu0 %v3402_v31  ;;  %1875 = vmatprep.subr.bf16.mxu1 %v3413_v34  ;;  %v3489_v31 = vld [vmem:[#allocation2 + $0x3c8] ss:$16 sps:$4 sm:$0xff]   ;;  %v3492_v34 = vld [vmem:[#allocation2 + $0x7e0] ss:$16 sps:$4 sm:$0xff]  }
  0xac   :  { %1793 = vmatprep.subr.bf16.mxu0 %v3410_v33  ;;  %1823 = vmatprep.mubr.bf16.mxu0 %v3920_v35  ;;  %v3497_v33 = vld [vmem:[#allocation2 + $0x3ec] ss:$16 sps:$4 sm:$0xff]  }
  0xad   :  { %1905 = vmatprep.mubr.bf16.mxu1 %v3886_v3  ;;  %v3429_v3 = vld [vmem:[#allocation2 + $0x288] ss:$16 sps:$4 sm:$0xff]  }
  0xae   :  { %1876 = vmatpush1.bf16.msra.mxu1 %v3411_v37  ;;  %v3501_v37 = vld [vmem:[#allocation2 + $0x40c] ss:$16 sps:$4 sm:$0xff]  }
  0xaf   :  { %1794 = vmatpush1.bf16.msra.mxu0 %v3408_v36  ;;  %1877 = vmatprep.subr.bf16.mxu1 %v3419_v39  ;;  %v3495_v36 = vld [vmem:[#allocation2 + $0x3e8] ss:$16 sps:$4 sm:$0xff]   ;;  %v3928_v39 = vpack.c.bf16 %v3912_v24, %v3912_v24 }
  0xb0   :  { %1795 = vmatprep.subr.bf16.mxu0 %v3416_v38  ;;  %v3499_v38 = vld [vmem:[#allocation2 + $0x408] ss:$16 sps:$4 sm:$0xff]  }
  0xb1   :  { %v3598_v24 = vld [vmem:[#allocation5 + $0x10] ss:$8 sps:$4 sm:$0xff]  }
  0xb2   :  { %1878 = vmatpush1.bf16.msra.mxu1 %v3417_v41  ;;  %v3595_v41 = vld [vmem:[#allocation5] ss:$8 sps:$4 sm:$0xff]  }
  0xb3   :  { %1796 = vmatpush1.bf16.msra.mxu0 %v3414_v40  ;;  %1879 = vmatprep.subr.bf16.mxu1 %v3425_v16  ;;  %v3504_v40 = vld [vmem:[#allocation2 + $0x42c] ss:$16 sps:$4 sm:$0xff]   ;;  %v3502_v16 = vld [vmem:[#allocation2 + $0x428] ss:$16 sps:$4 sm:$0xff]  }
  0xb4   :  { %1797 = vmatprep.subr.bf16.mxu0 %v3422_v42  ;;  %v3597_v42 = vld [vmem:[#allocation5 + $0x4] ss:$8 sps:$4 sm:$0xff]  }
  0xb6   :  { %1880 = vmatpush1.bf16.msra.mxu1 %v3423_v45  ;;  %v3507_v45 = vld [vmem:[#allocation2 + $0x44c] ss:$16 sps:$4 sm:$0xff]  }
  0xb7   :  { %1798 = vmatpush1.bf16.msra.mxu0 %v3420_v44  ;;  %1881 = vmatprep.subr.bf16.mxu1 %v3431_v47  ;;  %v3600_v44 = vld [vmem:[#allocation5 + $0x14] ss:$8 sps:$4 sm:$0xff]   ;;  %v3505_v47 = vld [vmem:[#allocation2 + $0x448] ss:$16 sps:$4 sm:$0xff]  }
  0xb8   :  { %1799 = vmatprep.subr.bf16.mxu0 %v3428_v46  ;;  %v3603_v46 = vld [vmem:[#allocation5 + $0x24] ss:$8 sps:$4 sm:$0xff]  }
  0xba   :  { %1882 = vmatpush1.bf16.msra.mxu1 %v3429_v3  ;;  %v3508_v3 = vld [vmem:[#allocation2 + $0x468] ss:$16 sps:$4 sm:$0xff]  }
  0xbb   :  { %1800 = vmatpush1.bf16.msra.mxu0 %v3426_v48  ;;  %1883 = vmatprep.subr.bf16.mxu1 %v3437_v52  ;;  %v3510_v48 = vld [vmem:[#allocation2 + $0x46c] ss:$16 sps:$4 sm:$0xff]  }
  0xbc   :  { %1801 = vmatprep.subr.bf16.mxu0 %v3434_v50  ;;  %v3513_v50 = vld [vmem:[#allocation2 + $0x48c] ss:$16 sps:$4 sm:$0xff]  }
  0xbd   :  { %v3606_v52 = vld [vmem:[#allocation5 + $0x34] ss:$8 sps:$4 sm:$0xff]  }
  0xbe   :  { %1884 = vmatpush1.bf16.msra.mxu1 %v3435_v54  ;;  %v3511_v54 = vld [vmem:[#allocation2 + $0x488] ss:$16 sps:$4 sm:$0xff]  }
  0xbf   :  { %1802 = vmatpush1.bf16.msra.mxu0 %v3432_v53  ;;  %1885 = vmatprep.subr.bf16.mxu1 %v3443_v56  ;;  %v3609_v53 = vld [vmem:[#allocation5 + $0x44] ss:$8 sps:$4 sm:$0xff]   ;;  %v3607_v56 = vld [vmem:[#allocation5 + $0x40] ss:$8 sps:$4 sm:$0xff]  }
  0xc0   :  { %1803 = vmatprep.subr.bf16.mxu0 %v3440_v55  ;;  %v3516_v55 = vld [vmem:[#allocation2 + $0x4ac] ss:$16 sps:$4 sm:$0xff]  }
  0xc2   :  { %1886 = vmatpush1.bf16.msra.mxu1 %v3441_v58  ;;  %v3514_v58 = vld [vmem:[#allocation2 + $0x4a8] ss:$16 sps:$4 sm:$0xff]  }
  0xc3   :  { %1804 = vmatpush1.bf16.msra.mxu0 %v3438_v57  ;;  %1887 = vmatprep.subr.bf16.mxu1 %v3449_v60  ;;  %v3612_v57 = vld [vmem:[#allocation5 + $0x54] ss:$8 sps:$4 sm:$0xff]   ;;  %v3610_v60 = vld [vmem:[#allocation5 + $0x50] ss:$8 sps:$4 sm:$0xff]  }
  0xc4   :  { %1805 = vmatprep.subr.bf16.mxu0 %v3446_v59  ;;  %v3519_v59 = vld [vmem:[#allocation2 + $0x4cc] ss:$16 sps:$4 sm:$0xff]  }
  0xc6   :  { %1888 = vmatpush1.bf16.msra.mxu1 %v3447_v62  ;;  %v3517_v62 = vld [vmem:[#allocation2 + $0x4c8] ss:$16 sps:$4 sm:$0xff]  }
  0xc7   :  { %1806 = vmatpush1.bf16.msra.mxu0 %v3444_v61  ;;  %1889 = vmatprep.subr.bf16.mxu1 %v3455_v0  ;;  %v3615_v61 = vld [vmem:[#allocation5 + $0x64] ss:$8 sps:$4 sm:$0xff]   ;;  %v3613_v0 = vld [vmem:[#allocation5 + $0x60] ss:$8 sps:$4 sm:$0xff]  }
  0xc8   :  { %1807 = vmatprep.subr.bf16.mxu0 %v3452_v63  ;;  %v3522_v63 = vld [vmem:[#allocation2 + $0x4ec] ss:$16 sps:$4 sm:$0xff]  }
  0xca   :  { %1890 = vmatpush1.bf16.msra.mxu1 %v3453_v2  ;;  %v3520_v2 = vld [vmem:[#allocation2 + $0x4e8] ss:$16 sps:$4 sm:$0xff]  }
  0xcb   :  { %1808 = vmatpush1.bf16.msra.mxu0 %v3450_v1  ;;  %1891 = vmatprep.subr.bf16.mxu1 %v3461_v5  ;;  %v3618_v1 = vld [vmem:[#allocation5 + $0x74] ss:$8 sps:$4 sm:$0xff]   ;;  %v3616_v5 = vld [vmem:[#allocation5 + $0x70] ss:$8 sps:$4 sm:$0xff]  }
  0xcc   :  { %1809 = vmatprep.subr.bf16.mxu0 %v3458_v4  ;;  %v3525_v4 = vld [vmem:[#allocation2 + $0x50c] ss:$16 sps:$4 sm:$0xff]  }
  0xce   :  { %1892 = vmatpush1.bf16.msra.mxu1 %v3459_v7  ;;  %v3523_v7 = vld [vmem:[#allocation2 + $0x508] ss:$16 sps:$4 sm:$0xff]  }
  0xcf   :  { %1810 = vmatpush1.bf16.msra.mxu0 %v3456_v6  ;;  %1893 = vmatprep.subr.bf16.mxu1 %v3467_v9  ;;  %v3621_v6 = vld [vmem:[#allocation5 + $0x84] ss:$8 sps:$4 sm:$0xff]   ;;  %v3619_v9 = vld [vmem:[#allocation5 + $0x80] ss:$8 sps:$4 sm:$0xff]  }
  0xd0   :  { %1811 = vmatprep.subr.bf16.mxu0 %v3464_v8  ;;  %v3528_v8 = vld [vmem:[#allocation2 + $0x52c] ss:$16 sps:$4 sm:$0xff]  }
  0xd2   :  { %1894 = vmatpush1.bf16.msra.mxu1 %v3465_v11  ;;  %v3526_v11 = vld [vmem:[#allocation2 + $0x528] ss:$16 sps:$4 sm:$0xff]  }
  0xd3   :  { %1812 = vmatpush1.bf16.msra.mxu0 %v3462_v10  ;;  %1895 = vmatprep.subr.bf16.mxu1 %v3473_v13  ;;  %v3624_v10 = vld [vmem:[#allocation5 + $0x94] ss:$8 sps:$4 sm:$0xff]   ;;  %v3622_v13 = vld [vmem:[#allocation5 + $0x90] ss:$8 sps:$4 sm:$0xff]  }
  0xd4   :  { %1813 = vmatprep.subr.bf16.mxu0 %v3470_v12  ;;  %v3531_v12 = vld [vmem:[#allocation2 + $0x54c] ss:$16 sps:$4 sm:$0xff]  }
  0xd6   :  { %1896 = vmatpush1.bf16.msra.mxu1 %v3471_v15  ;;  %v3529_v15 = vld [vmem:[#allocation2 + $0x548] ss:$16 sps:$4 sm:$0xff]  }
  0xd7   :  { %1814 = vmatpush1.bf16.msra.mxu0 %v3468_v14  ;;  %1897 = vmatprep.subr.bf16.mxu1 %v3479_v19  ;;  %v3627_v14 = vld [vmem:[#allocation5 + $0xa4] ss:$8 sps:$4 sm:$0xff]   ;;  %v3625_v19 = vld [vmem:[#allocation5 + $0xa0] ss:$8 sps:$4 sm:$0xff]  }
  0xd8   :  { %1815 = vmatprep.subr.bf16.mxu0 %v3476_v17  ;;  %v3534_v17 = vld [vmem:[#allocation2 + $0x56c] ss:$16 sps:$4 sm:$0xff]  }
  0xda   :  { %1898 = vmatpush1.bf16.msra.mxu1 %v3477_v21  ;;  %v3532_v21 = vld [vmem:[#allocation2 + $0x568] ss:$16 sps:$4 sm:$0xff]  }
  0xdb   :  { %1816 = vmatpush1.bf16.msra.mxu0 %v3474_v20  ;;  %1899 = vmatprep.subr.bf16.mxu1 %v3485_v23  ;;  %v3630_v20 = vld [vmem:[#allocation5 + $0xb4] ss:$8 sps:$4 sm:$0xff]   ;;  %v3628_v23 = vld [vmem:[#allocation5 + $0xb0] ss:$8 sps:$4 sm:$0xff]  }
  0xdc   :  { %1817 = vmatprep.subr.bf16.mxu0 %v3482_v22  ;;  %v3537_v22 = vld [vmem:[#allocation2 + $0x58c] ss:$16 sps:$4 sm:$0xff]  }
  0xde   :  { %1900 = vmatpush1.bf16.msra.mxu1 %v3483_v26  ;;  %v3535_v26 = vld [vmem:[#allocation2 + $0x588] ss:$16 sps:$4 sm:$0xff]  }
  0xdf   :  { %1818 = vmatpush1.bf16.msra.mxu0 %v3480_v25  ;;  %1901 = vmatprep.subr.bf16.mxu1 %v3491_v28  ;;  %v3633_v25 = vld [vmem:[#allocation5 + $0xc4] ss:$8 sps:$4 sm:$0xff]   ;;  %v3631_v28 = vld [vmem:[#allocation5 + $0xc0] ss:$8 sps:$4 sm:$0xff]  }
  0xe0   :  { %1819 = vmatprep.subr.bf16.mxu0 %v3488_v27  ;;  %v3540_v27 = vld [vmem:[#allocation2 + $0x5ac] ss:$16 sps:$4 sm:$0xff]  }
  0xe2   :  { %1902 = vmatpush1.bf16.msra.mxu1 %v3489_v31  ;;  %v3538_v31 = vld [vmem:[#allocation2 + $0x5a8] ss:$16 sps:$4 sm:$0xff]  }
  0xe3   :  { %1820 = vmatpush1.bf16.msra.mxu0 %v3486_v29  ;;  %1903 = vmatprep.subr.bf16.mxu1 %v3497_v33  ;;  %v3636_v29 = vld [vmem:[#allocation5 + $0xd4] ss:$8 sps:$4 sm:$0xff]   ;;  %v3634_v33 = vld [vmem:[#allocation5 + $0xd0] ss:$8 sps:$4 sm:$0xff]  }
  0xe4   :  { %1821 = vmatprep.subr.bf16.mxu0 %v3494_v32  ;;  %v3543_v32 = vld [vmem:[#allocation2 + $0x5cc] ss:$16 sps:$4 sm:$0xff]  }
  0xe6   :  { %1904 = vmatpush1.bf16.msra.mxu1 %v3495_v36  ;;  %v3546_v36 = vld [vmem:[#allocation2 + $0x5ec] ss:$16 sps:$4 sm:$0xff]  }
  0xe7   :  { %1822 = vmatpush1.bf16.msra.mxu0 %v3492_v34  ;;  %1914 = vmatprep.subr.bf16.mxu1 %v3501_v37  ;;  %v3541_v34 = vld [vmem:[#allocation2 + $0x5c8] ss:$16 sps:$4 sm:$0xff]  }
  0xe8   :  { %2411 = vmatprep.subr.bf16.mxu0 %v3597_v42  ;;  %v3544_v37 = vld [vmem:[#allocation2 + $0x5e8] ss:$16 sps:$4 sm:$0xff]  }
  0xe9   :  { %1906 = vmatmul.mubr.bf16.vlgmr.msra.gmra.mrb[4].mxu1 %v3891_v18  ;;  %v3601_v18 = vld [vmem:[#allocation5 + $0x20] ss:$8 sps:$4 sm:$0xff]  }
  0xea   :  { %1824 = vmatmul.mubr.bf16.vlgmr.msra.gmra.mrb[0].mxu0 %v3928_v39  ;;  %1915 = vmatpush1.bf16.msra.mxu1 %v3499_v38  ;;  %v3549_v38 = vld [vmem:[#allocation2 + $0x60c] ss:$16 sps:$4 sm:$0xff]   ;;  %v3550_v42 = vld [vmem:[#allocation2 + $0x628] ss:$16 sps:$4 sm:$0xff]  }
  0xeb   :  { %1946 = vmatprep.mubr.bf16.mxu1 %v3906_v51  ;;  %1916 = vmatprep.subr.bf16.mxu1 %v3504_v40  ;;  %v3604_v51 = vld [vmem:[#allocation5 + $0x30] ss:$8 sps:$4 sm:$0xff]  }
  0xec   :  { %2412 = vmatpush1.bf16.msra.mxu0 %v3595_v41  ;;  %v3547_v40 = vld [vmem:[#allocation2 + $0x608] ss:$16 sps:$4 sm:$0xff]   ;;  %v3552_v41 = vld [vmem:[#allocation2 + $0x62c] ss:$16 sps:$4 sm:$0xff]  }
  0xed   :  { %2413 = vmatprep.subr.bf16.mxu0 %v3600_v44  ;;  %v3553_v44 = vld [vmem:[#allocation2 + $0x648] ss:$16 sps:$4 sm:$0xff]  }
  0xee   :  { %1917 = vmatpush1.bf16.msra.mxu1 %v3502_v16  ;;  %v3555_v16 = vld [vmem:[#allocation2 + $0x64c] ss:$16 sps:$4 sm:$0xff]  }
  0xef   :  { %1918 = vmatprep.subr.bf16.mxu1 %v3507_v45  ;;  %v3558_v45 = vld [vmem:[#allocation2 + $0x66c] ss:$16 sps:$4 sm:$0xff]  }
  0xf0   :  { %2414 = vmatpush1.bf16.msra.mxu0 %v3598_v24  ;;  %v3556_v24 = vld [vmem:[#allocation2 + $0x668] ss:$16 sps:$4 sm:$0xff]  }
  0xf1   :  { %2415 = vmatprep.subr.bf16.mxu0 %v3603_v46  ;;  %v3561_v46 = vld [vmem:[#allocation2 + $0x68c] ss:$16 sps:$4 sm:$0xff]  }
  0xf2   :  { %1919 = vmatpush1.bf16.msra.mxu1 %v3505_v47  ;;  %v3559_v47 = vld [vmem:[#allocation2 + $0x688] ss:$16 sps:$4 sm:$0xff]  }
  0xf3   :  { %1920 = vmatprep.subr.bf16.mxu1 %v3510_v48  ;;  %v3564_v48 = vld [vmem:[#allocation2 + $0x6ac] ss:$16 sps:$4 sm:$0xff]  }
  0xf4   :  { %2416 = vmatpush1.bf16.msra.mxu0 %v3601_v18  ;;  %v3567_v18 = vld [vmem:[#allocation2 + $0x6cc] ss:$16 sps:$4 sm:$0xff]  }
  0xf5   :  { %2417 = vmatprep.subr.bf16.mxu0 %v3606_v52 }
  0xf6   :  { %1921 = vmatpush1.bf16.msra.mxu1 %v3508_v3  ;;  %v3639_v3 = vld [vmem:[#allocation5 + $0xe4] ss:$8 sps:$4 sm:$0xff]  }
  0xf7   :  { %1922 = vmatprep.subr.bf16.mxu1 %v3513_v50  ;;  %v3637_v50 = vld [vmem:[#allocation5 + $0xe0] ss:$8 sps:$4 sm:$0xff]  }
  0xf8   :  { %2418 = vmatpush1.bf16.msra.mxu0 %v3604_v51 }
  0xf9   :  { %2419 = vmatprep.subr.bf16.mxu0 %v3609_v53  ;;  %v3565_v53 = vld [vmem:[#allocation2 + $0x6c8] ss:$16 sps:$4 sm:$0xff]  }
  0xfa   :  { %1923 = vmatpush1.bf16.msra.mxu1 %v3511_v54 }
  0xfb   :  { %1924 = vmatprep.subr.bf16.mxu1 %v3516_v55  ;;  %v3570_v55 = vld [vmem:[#allocation2 + $0x6ec] ss:$16 sps:$4 sm:$0xff]  }
  0xfc   :  { %2420 = vmatpush1.bf16.msra.mxu0 %v3607_v56  ;;  %v3642_v56 = vld [vmem:[#allocation5 + $0xf4] ss:$8 sps:$4 sm:$0xff]  }
  0xfd   :  { %2421 = vmatprep.subr.bf16.mxu0 %v3612_v57  ;;  %v3640_v57 = vld [vmem:[#allocation5 + $0xf0] ss:$8 sps:$4 sm:$0xff]  }
  0xfe   :  { %1925 = vmatpush1.bf16.msra.mxu1 %v3514_v58  ;;  %v3568_v58 = vld [vmem:[#allocation2 + $0x6e8] ss:$16 sps:$4 sm:$0xff]  }
  0xff   :  { %1926 = vmatprep.subr.bf16.mxu1 %v3519_v59  ;;  %v3573_v59 = vld [vmem:[#allocation2 + $0x70c] ss:$16 sps:$4 sm:$0xff]  }
 0x100   :  { %2422 = vmatpush1.bf16.msra.mxu0 %v3610_v60  ;;  %v3645_v60 = vld [vmem:[#allocation5 + $0x104] ss:$8 sps:$4 sm:$0xff]  }
 0x101   :  { %2423 = vmatprep.subr.bf16.mxu0 %v3615_v61  ;;  %v3571_v61 = vld [vmem:[#allocation2 + $0x708] ss:$16 sps:$4 sm:$0xff]  }
 0x102   :  { %1927 = vmatpush1.bf16.msra.mxu1 %v3517_v62  ;;  %v3576_v62 = vld [vmem:[#allocation2 + $0x72c] ss:$16 sps:$4 sm:$0xff]  }
 0x103   :  { %1928 = vmatprep.subr.bf16.mxu1 %v3522_v63  ;;  %v3574_v63 = vld [vmem:[#allocation2 + $0x728] ss:$16 sps:$4 sm:$0xff]  }
 0x104   :  { %2424 = vmatpush1.bf16.msra.mxu0 %v3613_v0  ;;  %v3579_v0 = vld [vmem:[#allocation2 + $0x74c] ss:$16 sps:$4 sm:$0xff]  }
 0x105   :  { %2425 = vmatprep.subr.bf16.mxu0 %v3618_v1  ;;  %v3577_v1 = vld [vmem:[#allocation2 + $0x748] ss:$16 sps:$4 sm:$0xff]  }
 0x106   :  { %1929 = vmatpush1.bf16.msra.mxu1 %v3520_v2  ;;  %v3582_v2 = vld [vmem:[#allocation2 + $0x76c] ss:$16 sps:$4 sm:$0xff]  }
 0x107   :  { %1930 = vmatprep.subr.bf16.mxu1 %v3525_v4  ;;  %v3580_v4 = vld [vmem:[#allocation2 + $0x768] ss:$16 sps:$4 sm:$0xff]  }
 0x108   :  { %2426 = vmatpush1.bf16.msra.mxu0 %v3616_v5  ;;  %v3585_v5 = vld [vmem:[#allocation2 + $0x78c] ss:$16 sps:$4 sm:$0xff]  }
 0x109   :  { %2427 = vmatprep.subr.bf16.mxu0 %v3621_v6  ;;  %v3583_v6 = vld [vmem:[#allocation2 + $0x788] ss:$16 sps:$4 sm:$0xff]  }
 0x10a   :  { %1931 = vmatpush1.bf16.msra.mxu1 %v3523_v7  ;;  %v3588_v7 = vld [vmem:[#allocation2 + $0x7ac] ss:$16 sps:$4 sm:$0xff]  }
 0x10b   :  { %1932 = vmatprep.subr.bf16.mxu1 %v3528_v8  ;;  %v3586_v8 = vld [vmem:[#allocation2 + $0x7a8] ss:$16 sps:$4 sm:$0xff]  }
 0x10c   :  { %2428 = vmatpush1.bf16.msra.mxu0 %v3619_v9  ;;  %v3591_v9 = vld [vmem:[#allocation2 + $0x7cc] ss:$16 sps:$4 sm:$0xff]  }
 0x10d   :  { %2429 = vmatprep.subr.bf16.mxu0 %v3624_v10  ;;  %v3589_v10 = vld [vmem:[#allocation2 + $0x7c8] ss:$16 sps:$4 sm:$0xff]  }
 0x10e   :  { %1933 = vmatpush1.bf16.msra.mxu1 %v3526_v11  ;;  %v3594_v11 = vld [vmem:[#allocation2 + $0x7ec] ss:$16 sps:$4 sm:$0xff]  }
 0x10f   :  { %1934 = vmatprep.subr.bf16.mxu1 %v3531_v12  ;;  %v3592_v12 = vld [vmem:[#allocation2 + $0x7e8] ss:$16 sps:$4 sm:$0xff]  }
 0x110   :  { %2430 = vmatpush1.bf16.msra.mxu0 %v3622_v13  ;;  %v3937_v13 = vsub.s32 0, %v3876_v43 }
 0x111   :  { %2431 = vmatprep.subr.bf16.mxu0 %v3627_v14  ;;  %v3942_v14 = vld [vmem:[%s4064_s4] sm:$0xf] }
 0x112   :  { %1935 = vmatpush1.bf16.msra.mxu1 %v3529_v15  ;;  %v3945_v15 = vsub.s32 1, %v3876_v43 }
 0x113   :  { %1936 = vmatprep.subr.bf16.mxu1 %v3534_v17  ;;  %v371_v17 = vrot.slane %v3942_v14, %v3937_v13 }
 0x114   :  { %2432 = vmatpush1.bf16.msra.mxu0 %v3625_v19  ;;  %v375_v19 = vrot.slane %v3942_v14, %v3945_v15 }
 0x115   :  { %2433 = vmatprep.subr.bf16.mxu0 %v3630_v20 }
 0x116   :  { %1937 = vmatpush1.bf16.msra.mxu1 %v3532_v21 }
 0x117   :  { %1938 = vmatprep.subr.bf16.mxu1 %v3537_v22 }
 0x118   :  { %2434 = vmatpush1.bf16.msra.mxu0 %v3628_v23 }
 0x119   :  { %2435 = vmatprep.subr.bf16.mxu0 %v3633_v25 }
 0x11a   :  { %1939 = vmatpush1.bf16.msra.mxu1 %v3535_v26 }
 0x11b   :  { %1940 = vmatprep.subr.bf16.mxu1 %v3540_v27 }
 0x11c   :  { %2436 = vmatpush1.bf16.msra.mxu0 %v3631_v28 }
 0x11d   :  { %2437 = vmatprep.subr.bf16.mxu0 %v3636_v29 }
 0x11e   :  { %1941 = vmatpush1.bf16.msra.mxu1 %v3538_v31 }
 0x11f   :  { %1942 = vmatprep.subr.bf16.mxu1 %v3543_v32 }
 0x120   :  { %2438 = vmatpush1.bf16.msra.mxu0 %v3634_v33  ;;  %v3643_v33 = vld [vmem:[#allocation5 + $0x100] ss:$8 sps:$4 sm:$0xff]  }
 0x121   :  { %2439 = vmatprep.subr.bf16.mxu0 %v3639_v3  ;;  %v3667_v3 = vld [vmem:[#allocation5 + $0x180] ss:$8 sps:$4 sm:$0xff]  }
 0x122   :  { %1943 = vmatpush1.bf16.msra.mxu1 %v3541_v34 }
 0x123   :  { %1944 = vmatprep.subr.bf16.mxu1 %v3546_v36  ;;  %v3648_v36 = vld [vmem:[#allocation5 + $0x114] ss:$8 sps:$4 sm:$0xff]  }
 0x124   :  { %2440 = vmatpush1.bf16.msra.mxu0 %v3637_v50  ;;  %v3670_v50 = vld [vmem:[#allocation5 + $0x190] ss:$8 sps:$4 sm:$0xff]  }
 0x125   :  { %2441 = vmatprep.subr.bf16.mxu0 %v3642_v56  ;;  %v3679_v56 = vld [vmem:[#allocation5 + $0x1c0] ss:$8 sps:$4 sm:$0xff]  }
 0x126   :  { %1945 = vmatpush1.bf16.msra.mxu1 %v3544_v37  ;;  %v3646_v37 = vld [vmem:[#allocation5 + $0x110] ss:$8 sps:$4 sm:$0xff]  }
 0x127   :  { %1955 = vmatprep.subr.bf16.mxu1 %v3549_v38  ;;  %v3651_v38 = vld [vmem:[#allocation5 + $0x124] ss:$8 sps:$4 sm:$0xff]  }
 0x128   :  { %2442 = vmatpush1.bf16.msra.mxu0 %v3640_v57  ;;  %v3684_v57 = vld [vmem:[#allocation5 + $0x1d4] ss:$8 sps:$4 sm:$0xff]  }
 0x129   :  { %1947 = vmatmul.mubr.bf16.vlgmr.msra.gmra.mrb[4].mxu1 %v3918_v30  ;;  %v3562_v30 = vld [vmem:[#allocation2 + $0x6a8] ss:$16 sps:$4 sm:$0xff]   ;;  %2452 = vmatprep.subr.bf16.mxu0 %v3645_v60 }
 0x12a   :  { %1956 = vmatpush1.bf16.msra.mxu1 %v3547_v40  ;;  %1987 = vmatprep.mubr.bf16.mxu1 %v3920_v35  ;;  %v3649_v40 = vld [vmem:[#allocation5 + $0x120] ss:$8 sps:$4 sm:$0xff]  }
 0x12b   :  { %1957 = vmatprep.subr.bf16.mxu1 %v3552_v41  ;;  %v3654_v41 = vld [vmem:[#allocation5 + $0x134] ss:$8 sps:$4 sm:$0xff]   ;;  %v3685_v60 = vld [vmem:[#allocation5 + $0x1e0] ss:$8 sps:$4 sm:$0xff]  }
 0x12e   :  { %1958 = vmatpush1.bf16.msra.mxu1 %v3550_v42  ;;  %v3652_v42 = vld [vmem:[#allocation5 + $0x130] ss:$8 sps:$4 sm:$0xff]  }
 0x12f   :  { %1959 = vmatprep.subr.bf16.mxu1 %v3555_v16  ;;  %v3657_v16 = vld [vmem:[#allocation5 + $0x144] ss:$8 sps:$4 sm:$0xff]  }
 0x132   :  { %1960 = vmatpush1.bf16.msra.mxu1 %v3553_v44  ;;  %v3655_v44 = vld [vmem:[#allocation5 + $0x140] ss:$8 sps:$4 sm:$0xff]  }
 0x133   :  { %1961 = vmatprep.subr.bf16.mxu1 %v3558_v45  ;;  %v3660_v45 = vld [vmem:[#allocation5 + $0x154] ss:$8 sps:$4 sm:$0xff]  }
 0x136   :  { %1962 = vmatpush1.bf16.msra.mxu1 %v3556_v24  ;;  %v3658_v24 = vld [vmem:[#allocation5 + $0x150] ss:$8 sps:$4 sm:$0xff]  }
 0x137   :  { %1963 = vmatprep.subr.bf16.mxu1 %v3561_v46  ;;  %v3663_v46 = vld [vmem:[#allocation5 + $0x164] ss:$8 sps:$4 sm:$0xff]  }
 0x13a   :  { %1964 = vmatpush1.bf16.msra.mxu1 %v3559_v47  ;;  %v3661_v47 = vld [vmem:[#allocation5 + $0x160] ss:$8 sps:$4 sm:$0xff]  }
 0x13b   :  { %1965 = vmatprep.subr.bf16.mxu1 %v3564_v48  ;;  %v3666_v48 = vld [vmem:[#allocation5 + $0x174] ss:$8 sps:$4 sm:$0xff]  }
 0x13c   :  { %v1702_v35 = vpop.f32.mrb[0].mxu1 }
 0x13d   :  { %v1704_v52 = vpop.f32.mrb[1].mxu1  ;;  %v1703_v20 = vadd.f32 %v1702_v35, %v371_v17  ;;  %v3672_v35 = vld [vmem:[#allocation5 + $0x194] ss:$8 sps:$4 sm:$0xff]  }
 0x13e   :  { %v1706_v51 = vpop.f32.mrb[2].mxu1  ;;  %1966 = vmatpush1.bf16.msra.mxu1 %v3562_v30  ;;  %v1705_v21 = vadd.f32 %v1704_v52, %v375_v19  ;;  %v3664_v30 = vld [vmem:[#allocation5 + $0x170] ss:$8 sps:$4 sm:$0xff]   ;;  %v3675_v52 = vld [vmem:[#allocation5 + $0x1a4] ss:$8 sps:$4 sm:$0xff]  }
 0x13f   :  { %v1707_v54 = vpop.f32.mrb[3].mxu1  ;;  %1967 = vmatprep.subr.bf16.mxu1 %v3567_v18  ;;  %v3669_v18 = vld [vmem:[#allocation5 + $0x184] ss:$8 sps:$4 sm:$0xff]   ;;  %v3673_v51 = vld [vmem:[#allocation5 + $0x1a0] ss:$8 sps:$4 sm:$0xff]  }
 0x140   :  { %v3676_v54 = vld [vmem:[#allocation5 + $0x1b0] ss:$8 sps:$4 sm:$0xff]  }
 0x142   :  { %1968 = vmatpush1.bf16.msra.mxu1 %v3565_v53  ;;  %v3678_v53 = vld [vmem:[#allocation5 + $0x1b4] ss:$8 sps:$4 sm:$0xff]  }
 0x143   :  { %1969 = vmatprep.subr.bf16.mxu1 %v3570_v55  ;;  %v3681_v55 = vld [vmem:[#allocation5 + $0x1c4] ss:$8 sps:$4 sm:$0xff]  }
 0x146   :  { %1970 = vmatpush1.bf16.msra.mxu1 %v3568_v58  ;;  %v3682_v58 = vld [vmem:[#allocation5 + $0x1d0] ss:$8 sps:$4 sm:$0xff]  }
 0x147   :  { %1971 = vmatprep.subr.bf16.mxu1 %v3573_v59  ;;  %v3687_v59 = vld [vmem:[#allocation5 + $0x1e4] ss:$8 sps:$4 sm:$0xff]  }
 0x14a   :  { %1972 = vmatpush1.bf16.msra.mxu1 %v3571_v61  ;;  %v3690_v61 = vld [vmem:[#allocation5 + $0x1f4] ss:$8 sps:$4 sm:$0xff]  }
 0x14b   :  { %1973 = vmatprep.subr.bf16.mxu1 %v3576_v62  ;;  %v3688_v62 = vld [vmem:[#allocation5 + $0x1f0] ss:$8 sps:$4 sm:$0xff]  }
 0x14e   :  { %1974 = vmatpush1.bf16.msra.mxu1 %v3574_v63  ;;  %v378_v63 = vsub.s32 2, %v3876_v43 }
 0x14f   :  { %1975 = vmatprep.subr.bf16.mxu1 %v3579_v0  ;;  %v382_v0 = vsub.s32 3, %v3876_v43 }
 0x152   :  { %1976 = vmatpush1.bf16.msra.mxu1 %v3577_v1  ;;  %v379_v1 = vrot.slane %v3942_v14, %v378_v63 }
 0x153   :  { %1977 = vmatprep.subr.bf16.mxu1 %v3582_v2  ;;  %v383_v2 = vrot.slane %v3942_v14, %v382_v0 }
 0x156   :  { %1978 = vmatpush1.bf16.msra.mxu1 %v3580_v4 }
 0x157   :  { %1979 = vmatprep.subr.bf16.mxu1 %v3585_v5 }
 0x15a   :  { %1980 = vmatpush1.bf16.msra.mxu1 %v3583_v6 }
 0x15b   :  { %1981 = vmatprep.subr.bf16.mxu1 %v3588_v7 }
 0x15e   :  { %1982 = vmatpush1.bf16.msra.mxu1 %v3586_v8 }
 0x15f   :  { %1983 = vmatprep.subr.bf16.mxu1 %v3591_v9 }
 0x162   :  { %1984 = vmatpush1.bf16.msra.mxu1 %v3589_v10 }
 0x163   :  { %1985 = vmatprep.subr.bf16.mxu1 %v3594_v11 }
 0x166   :  { %1986 = vmatpush1.bf16.msra.mxu1 %v3592_v12 }
 0x169   :  { %1988 = vmatmul.mubr.bf16.vlgmr.msra.gmra.mrb[4].mxu1 %v3928_v39 }
 0x1bd   :  { %v1825_v39 = vpop.f32.mrb[0].mxu0 }
 0x1be   :  { %v3170_v22 = vadd.f32 %v1825_v39, %v1703_v20  ;;  %v1827_v23 = vpop.f32.mrb[1].mxu0  ;;  %v3691_v39 = vld [vmem:[%s4063_s3 + $0x40] sm:$0xff]  }
 0x1bf   :  { %v3172_v25 = vadd.f32 %v1827_v23, %v1705_v21  ;;  %v1829_v26 = vpop.f32.mrb[2].mxu0  ;;  %3147 = vmatprep.subr.bf16.mxu1 %v3691_v39  ;;  %v3693_v23 = vld [vmem:[%s4063_s3 + $0x48] sm:$0xff]  }
 0x1c0   :  { %v3951_v27 = vmax.f32 %v3170_v22, 0.0  ;;  %v1830_v28 = vpop.f32.mrb[3].mxu0  ;;  %v3692_v22 = vld [vmem:[%s4063_s3] sm:$0xff]   ;;  %v3696_v26 = vld [vmem:[%s4063_s3 + $0x10] sm:$0xff]  }
 0x1c1   :  { %v3953_v29 = vmax.f32 %v3172_v25, 0.0  ;;  %3148 = vmatpush3.bf16.msra.mxu1 %v3692_v22  ;;  %v3695_v25 = vld [vmem:[%s4063_s3 + $0x50] sm:$0xff]   ;;  %v3698_v28 = vld [vmem:[%s4063_s3 + $0x18] sm:$0xff]  }
 0x1c2   :  { %v2023_v34 = vpack.c.bf16 %v3951_v27, %v3951_v27  ;;  %3149 = vmatprep.subr.bf16.mxu1 %v3693_v23 }
 0x1c3   :  { %v2004_v31 = vcombine.low %v3951_v27, %v3953_v29  ;;  %v2024_v32 = vpack.c.bf16 %v3953_v29, %v3953_v29  ;;  %v3697_v27 = vld [vmem:[%s4063_s3 + $0x58] sm:$0xff]   ;;  %v3699_v29 = vld [vmem:[%s4063_s3 + $0x60] sm:$0xff]  }
 0x1c5   :  { %2443 = vmatprep.mubr.bf16.mxu0 %v2024_v32  ;;  %v2012_v20 = vrot.slane %v2004_v31, %v3879_v49  ;;  %v3700_v31 = vld [vmem:[%s4063_s3 + $0x20] sm:$0xff]   ;;  %v3701_v32 = vld [vmem:[%s4063_s3 + $0x68] sm:$0xff]  }
 0x1c6   :  { %2444 = vmatmul.mubr.bf16.vlgmr.msra.gmra.mrb[4].mxu0 %v2023_v34  ;;  %v3703_v34 = vld [vmem:[%s4063_s3 + $0x70] sm:$0xff]  }
 0x1c7   :  { %2453 = vmatpush1.bf16.msra.mxu0 %v3643_v33  ;;  %v3702_v33 = vld [vmem:[%s4063_s3 + $0x28] sm:$0xff]  }
 0x1c8   :  { %2454 = vmatprep.subr.bf16.mxu0 %v3648_v36  ;;  %v3704_v36 = vld [vmem:[%s4063_s3 + $0x30] sm:$0xff]  }
 0x1cb   :  { %2455 = vmatpush1.bf16.msra.mxu0 %v3646_v37  ;;  %v3705_v37 = vld [vmem:[%s4063_s3 + $0x78] sm:$0xff]  }
 0x1cc   :  { %2456 = vmatprep.subr.bf16.mxu0 %v3651_v38  ;;  %v3706_v38 = vld [vmem:[%s4063_s3 + $0x38] sm:$0xff]  }
 0x1cf   :  { %2457 = vmatpush1.bf16.msra.mxu0 %v3649_v40 }
 0x1d0   :  { %2458 = vmatprep.subr.bf16.mxu0 %v3654_v41 }
 0x1d3   :  { %2459 = vmatpush1.bf16.msra.mxu0 %v3652_v42 }
 0x1d4   :  { %2460 = vmatprep.subr.bf16.mxu0 %v3657_v16 }
 0x1d7   :  { %2461 = vmatpush1.bf16.msra.mxu0 %v3655_v44 }
 0x1d8   :  { %2462 = vmatprep.subr.bf16.mxu0 %v3660_v45 }
 0x1db   :  { %2463 = vmatpush1.bf16.msra.mxu0 %v3658_v24 }
 0x1dc   :  { %2464 = vmatprep.subr.bf16.mxu0 %v3663_v46 }
 0x1df   :  { %2465 = vmatpush1.bf16.msra.mxu0 %v3661_v47 }
 0x1e0   :  { %2466 = vmatprep.subr.bf16.mxu0 %v3666_v48 }
 0x1e3   :  { %2467 = vmatpush1.bf16.msra.mxu0 %v3664_v30 }
 0x1e4   :  { %2468 = vmatprep.subr.bf16.mxu0 %v3669_v18 }
 0x1e7   :  { %2469 = vmatpush1.bf16.msra.mxu0 %v3667_v3 }
 0x1e8   :  { %2470 = vmatprep.subr.bf16.mxu0 %v3672_v35 }
 0x1eb   :  { %2471 = vmatpush1.bf16.msra.mxu0 %v3670_v50 }
 0x1ec   :  { %2472 = vmatprep.subr.bf16.mxu0 %v3675_v52 }
 0x1ef   :  { %2473 = vmatpush1.bf16.msra.mxu0 %v3673_v51 }
 0x1f0   :  { %2474 = vmatprep.subr.bf16.mxu0 %v3678_v53 }
 0x1f3   :  { %2475 = vmatpush1.bf16.msra.mxu0 %v3676_v54 }
 0x1f4   :  { %2476 = vmatprep.subr.bf16.mxu0 %v3681_v55 }
 0x1f7   :  { %2477 = vmatpush1.bf16.msra.mxu0 %v3679_v56 }
 0x1f8   :  { %2478 = vmatprep.subr.bf16.mxu0 %v3684_v57 }
 0x1fb   :  { %2479 = vmatpush1.bf16.msra.mxu0 %v3682_v58 }
 0x1fc   :  { %2480 = vmatprep.subr.bf16.mxu0 %v3687_v59 }
 0x1ff   :  { %2481 = vmatpush1.bf16.msra.mxu0 %v3685_v60 }
 0x200   :  { %2482 = vmatprep.subr.bf16.mxu0 %v3690_v61 }
 0x203   :  { %2483 = vmatpush1.bf16.msra.mxu0 %v3688_v62 }
 0x23c   :  { %v1989_v4 = vpop.f32.mrb[4].mxu1 }
 0x23d   :  { %v3173_v5 = vadd.f32 %v1989_v4, %v379_v1  ;;  %v1991_v6 = vpop.f32.mrb[5].mxu1 }
 0x23e   :  { %v3174_v7 = vadd.f32 %v1991_v6, %v383_v2  ;;  %v1993_v8 = vpop.f32.mrb[6].mxu1 }
 0x23f   :  { %v1998_v9 = vmax.f32 %v3173_v5, 0.0  ;;  %v1994_v10 = vpop.f32.mrb[7].mxu1 }
 0x240   :  { %v1999_v11 = vmax.f32 %v3174_v7, 0.0 }
 0x241   :  { %v2025_v19 = vpack.c.bf16 %v1998_v9, %v1998_v9 }
 0x242   :  { %v2005_v12 = vcombine.low %v1998_v9, %v1999_v11  ;;  %v2026_v17 = vpack.c.bf16 %v1999_v11, %v1999_v11 }
 0x244   :  { %v2019_v21 = vrot.slane %v2005_v12, %v3879_v49  ;;  %2484 = vmatprep.mubr.bf16.mxu0 %v2026_v17  ;;  %v3694_v49 = vld [vmem:[%s4063_s3 + $0x8] sm:$0xff]  }
 0x245   :  { %2485 = vmatmul.mubr.bf16.vlgmr.msra.gmra.mrb[4].mxu0 %v2025_v19  ;;  %3150 = vmatpush3.bf16.msra.mxu1 %v3694_v49 }
 0x246   :  { %v2020_v14 = vcombine.low %v2012_v20, %v2019_v21  ;;  %3151 = vmatprep.subr.bf16.mxu1 %v3695_v25  ;;  %v3814_v20 = vmov 1966171168  }
 0x247   :  { %v2539_v21 = vunpack.c.l.s4 %v3814_v20 }
 0x248   :  { %2022 = vst [vmem:[#allocation7] sm:$0xff] %v2020_v14 }
 0x249   :  { %3152 = vmatpush3.bf16.msra.mxu1 %v3696_v26  ;;  %v2540_v14 = vunpack.c.0.s8 %v2539_v21  ;;  %v108_v26 = vld [vmem:[%s4064_s4 + $0x4] sm:$0x3] }
 0x24a   :  { %3153 = vmatprep.subr.bf16.mxu1 %v3697_v27 }
 0x24b   :  { %v2543_v22 = vsub.s32 %v2540_v14, %v3876_v43  ;;  %v109_v43 = vld [vmem:[%s4064_s4 + $0x6] sm:$0x3] }
 0x24d   :  { %3154 = vmatpush3.bf16.msra.mxu1 %v3698_v28 }
 0x24e   :  { %3155 = vmatprep.subr.bf16.mxu1 %v3699_v29 }
 0x251   :  { %3156 = vmatpush3.bf16.msra.mxu1 %v3700_v31 }
 0x252   :  { %3157 = vmatprep.subr.bf16.mxu1 %v3701_v32 }
 0x255   :  { %3158 = vmatpush3.bf16.msra.mxu1 %v3702_v33 }
 0x256   :  { %3159 = vmatprep.subr.bf16.mxu1 %v3703_v34 }
 0x259   :  { %3160 = vmatpush3.bf16.msra.mxu1 %v3704_v36 }
 0x25a   :  { %3161 = vmatprep.subr.bf16.mxu1 %v3705_v37 }
 0x25d   :  { %3162 = vmatpush3.bf16.msra.mxu1 %v3706_v38 }
 0x318   :  { %v2486_v40 = vpop.f32.mrb[4].mxu0 }
 0x319   :  { %v2494_v41 = vsel %vm2493_vm0, %v2486_v40, 0.0  ;;  %v2488_v42 = vpop.f32.mrb[5].mxu0 }
 0x31a   :  { %v2495_v16 = vrot.slane %v2494_v41, 4  ;;  %v2501_v44 = vsel %vm2493_vm0, %v2488_v42, 0.0  ;;  %v2490_v45 = vpop.f32.mrb[6].mxu0 }
 0x31b   :  { %v2502_v24 = vrot.slane %v2501_v44, 4  ;;  %v2491_v46 = vpop.f32.mrb[7].mxu0 }
 0x31c   :  { %v2496_v47 = vadd.f32 %v2495_v16, %v2494_v41 }
 0x31d   :  { %v2503_v48 = vadd.f32 %v2502_v24, %v2501_v44 }
 0x31e   :  { %v2497_v30 = vrot.slane %v2496_v47, 2 }
 0x31f   :  { %v2504_v18 = vrot.slane %v2503_v48, 2 }
 0x320   :  { %v2498_v3 = vadd.f32 %v2497_v30, %v2496_v47 }
 0x321   :  { %v2505_v35 = vadd.f32 %v2504_v18, %v2503_v48 }
 0x322   :  { %v2499_v50 = vrot.slane %v2498_v3, 1 }
 0x323   :  { %v2506_v52 = vrot.slane %v2505_v35, 1 }
 0x324   :  { %v2500_v51 = vadd.f32 %v2499_v50, %v2498_v3 }
 0x325   :  { %v2507_v53 = vadd.f32 %v2506_v52, %v2505_v35 }
 0x326   :  { %v2509_v54 = vmul.f32 0.5, %v2500_v51 }
 0x327   :  { %v2510_v55 = vmul.f32 0.5, %v2507_v53 }
 0x328   :  { %v2511_v56 = vsub.f32 %v2486_v40, %v2509_v54 }
 0x329   :  { %v2512_v57 = vsub.f32 %v2488_v42, %v2510_v55 }
 0x32a   :  { %v2513_v58 = vmul.f32 %v2511_v56, %v2511_v56 }
 0x32b   :  { %v2514_v59 = vmul.f32 %v2512_v57, %v2512_v57 }
 0x32c   :  { %v2515_v60 = vsel %vm2493_vm0, %v2513_v58, 0.0 }
 0x32d   :  { %v2516_v61 = vrot.slane %v2515_v60, 4  ;;  %v2522_v62 = vsel %vm2493_vm0, %v2514_v59, 0.0 }
 0x32e   :  { %v2523_v63 = vrot.slane %v2522_v62, 4 }
 0x32f   :  { %v2517_v0 = vadd.f32 %v2516_v61, %v2515_v60 }
 0x330   :  { %v2524_v1 = vadd.f32 %v2523_v63, %v2522_v62 }
 0x331   :  { %v2518_v2 = vrot.slane %v2517_v0, 2 }
 0x332   :  { %v2525_v4 = vrot.slane %v2524_v1, 2 }
 0x333   :  { %v2519_v5 = vadd.f32 %v2518_v2, %v2517_v0 }
 0x334   :  { %v2526_v6 = vadd.f32 %v2525_v4, %v2524_v1 }
 0x335   :  { %v2520_v7 = vrot.slane %v2519_v5, 1 }
 0x336   :  { %v2527_v8 = vrot.slane %v2526_v6, 1 }
 0x337   :  { %v2521_v9 = vadd.f32 %v2520_v7, %v2519_v5 }
 0x338   :  { %v2528_v10 = vadd.f32 %v2527_v8, %v2526_v6 }
 0x339   :  { %v2529_v11 = vmul.f32 0.5, %v2521_v9 }
 0x33a   :  { %v2530_v12 = vmul.f32 0.5, %v2528_v10 }
 0x33b   :  { %v2531_v17 = vadd.f32 1e-05, %v2529_v11 }
 0x33c   :  { %v2532_v19 = vadd.f32 1e-05, %v2530_v12 }
 0x33d   :  { %3707 = vrsqrt.f32 %v2531_v17 }
 0x33e   :  { %3709 = vrsqrt.f32 %v2532_v19 }
 0x347   :  { %v3708_v39 = vpop.eup %3707 }
 0x348   :  { %v3710_v23 = vpop.eup %3709 }
 0x349   :  { %v2537_v49 = vcombine.low %v3708_v39, %v3710_v23 }
 0x34b   :  { %v2544_v25 = vrot.slane %v2537_v49, %v2543_v22 }
 0x34d   :  { %v2551_v27 = vrot.slane %v2544_v25, %v2543_v22 }
 0x34f   :  { %v2553_v28 = vmul.f32 %v2551_v27, %v108_v26 }
 0x351   :  { %v2558_v29 = vrot.slane %v2553_v28, %v3937_v13  ;;  %v2562_v31 = vrot.slane %v2553_v28, %v3945_v15 }
 0x353   :  { %v2565_v32 = vmul.f32 %v2558_v29, %v2509_v54  ;;  %v2566_v33 = vmul.f32 %v2562_v31, %v2510_v55  ;;  %v2587_v34 = vmul.f32 %v2562_v31, %v2488_v42  ;;  %v2586_v36 = vmul.f32 %v2558_v29, %v2486_v40 }
 0x355   :  { %v2569_v37 = vcombine.low %v2565_v32, %v2566_v33 }
 0x357   :  { %v2576_v38 = vrot.slane %v2569_v37, %v2543_v22 }
 0x359   :  { %v2583_v41 = vrot.slane %v2576_v38, %v2543_v22 }
 0x35b   :  { %v2585_v16 = vsub.f32 %v109_v43, %v2583_v41 }
 0x35d   :  { %v2596_v44 = vrot.slane %v2585_v16, %v3945_v15  ;;  %v2592_v45 = vrot.slane %v2585_v16, %v3937_v13 }
 0x35f   :  { %v2600_v24 = vadd.f32 %v2596_v44, %v2587_v34  ;;  %v2599_v46 = vadd.f32 %v2592_v45, %v2586_v36 }
 0x361   :  { %v2602_v47 = vmax.f32 %v2600_v24, 0.0  ;;  %v2601_v48 = vmax.f32 %v2599_v46, 0.0 }
 0x363   :  { %v2604_v30 = vpack.c.bf16 %v2602_v47, %v2602_v47  ;;  %v2603_v18 = vpack.c.bf16 %v2601_v48, %v2601_v48 }
 0x365   :  { %2771 = vmatprep.mubr.bf16.mxu1 %v2604_v30 }
 0x366   :  { %2772 = vmatmul.mubr.bf16.vlgmr.msra.gmra.mrb[8].mxu1 %v2603_v18 }
 0x367   :  { %3766 = shalt.err (!%p3763_p6)
}
 0x368   :  { %s3767_s17 = scalar_lea.hbm %s4065_s5, 128 }
 0x369   :  { %p3768_p7 = scmp.ne.s32.totalorder %s4065_s5, %s3767_s17  ;;  %p3771_p8 = scmp.lt.u32.totalorder %s3767_s17, %s4065_s5 }
 0x36b   :  { %p3773_p9 = pnand %p3771_p8, %p3768_p7 }
 0x36d   :  { %3776 = shalt.err (!%p3773_p9)
}
 0x36e   :  { %2789 = dma.vmem_to_hbm [thread:$0]  %s2787_s13, 128, %s4065_s5, [#allocation4]   ;;  %v3130_v15 = vld [vmem:[%s4064_s4 + $0x8] ss:$0 sm:$0xff] }
 0x36f   :  { %s3816_s24 = smov [#allocation8]  }
 0x370   :  { %s2796_s25 = sshll.u32 %s3816_s24, 4  ;;  %s2797_s25 = int_to_ptr.vmem [resolvable:$true] %s2796_s25 }
 0x371   :  { %s3777_s26 = scalar_lea.vmem %s2797_s25, 32  ;;  %p3782_p11 = scmp.lt.s32.totalorder %s2797_s25, %s2797_s25 }
 0x372   :  { %p3778_p10 = scmp.ne.s32.totalorder %s2797_s25, %s3777_s26  ;;  %p3783_p12 = scmp.lt.s32.totalorder %s3777_s26, %s3777_s26 }
 0x374   :  { %p3784_p13 = por %p3783_p12, %p3782_p11 }
 0x376   :  { %p3785_p0 = pnand %p3784_p13, %p3778_p10 }
 0x439   :  { %v3163_v13 = vpop.f32.mrb[8].mxu1 }
 0x43a   :  { %v3164_v40 = vpop.f32.mrb[9].mxu1 }
 0x43b   :  { %v3165_v42 = vadd.f32 %v3164_v40, %v3163_v13  ;;  %v3166_v3 = vpop.f32.mrb[10].mxu1 }
 0x43c   :  { %v3167_v35 = vpop.f32.mrb[11].mxu1 }
 0x43d   :  { %v2774_v50 = vadd.f32 %v3165_v42, %v3130_v15 }
 0x43f   :  { %2779 = vst [vmem:[#allocation8] sm:$0x3] %v2774_v50 }
 0x440   :  { %3788 = shalt.err (!%p3785_p0)
}
 0x441   :  { %s3789_s4 = scalar_lea.hbm %s4066_s6, 32 }
 0x442   :  { %p3790_p1 = scmp.ne.s32.totalorder %s4066_s6, %s3789_s4  ;;  %p3793_p2 = scmp.lt.u32.totalorder %s3789_s4, %s4066_s6 }
 0x444   :  { %p3795_p3 = pnand %p3793_p2, %p3790_p1 }
 0x446   :  { %3798 = shalt.err (!%p3795_p3)
}
 0x447   :  { %2799 = dma.vmem_to_hbm [thread:$0]  %s2797_s25, 32, %s4066_s6, [#allocation9]  }
 0x448   :  { %3803 = dma.done.wait [#allocation4], 128  }
 0x449   :  { %3804 = vsyncadd [#allocation4], 4294967168 }
 0x44a   :  { %3805 = dma.done.wait [#allocation9], 32  }
 0x44b   :  { %3806 = vsyncadd [#allocation9], 4294967264 }
 0x44c   :  { %2806 = vsyncpa [#allocation3], 1 }
 0x44d   :  { %2807 = vsyncpa [#allocation6], 1 }
 0x44e   :  { %2808 = vsyncpa [#allocation4], 1 }
 0x44f   :  { %2809 = vsyncpa [#allocation9], 1 }

</bundles_post_ra>
